<compile_context>
chip_gen: v7x
topology: tpu7x:2x2x1
jax: 0.10.0
libtpu: 0.0.40
codegen_flags: <defaults>
</compile_context>

<pallas_src>
import functools

import jax
import jax.numpy as jnp
from jax.experimental import pallas as pl
from jax.experimental.pallas import tpu as pltpu


def _lstm_fused_kernel(x_ref, wx_ref, uh_ref, b_ref, wout_ref, bout_ref,
                       out_ref, hbuf_ref, *, batch, seq_len):
    """Multi-layer LSTM recurrence + fused vocab projection, one invocation.

    x_ref:    (T*B, H)   bf16  embedded inputs, time-major (row = t*B + b)
    wx_ref:   (L, H, 4H) bf16  fused input->gate weights, gate order [f,i,o,g]
    uh_ref:   (L, H, 4H) bf16  fused hidden->gate weights
    b_ref:    (L, 1, 4H) f32   fused gate biases
    wout_ref: (H, Vp)    bf16  output projection, zero-padded to Vp=128 lanes
    bout_ref: (1, Vp)    f32   output bias, zero-padded
    out_ref:  (T*B, Vp)  f32   logits (padded lanes are zero)
    hbuf_ref: (T*B, H)   f32   VMEM scratch holding the current layer's outputs
    """
    TB, H = x_ref.shape
    L = wx_ref.shape[0]
    B, T = batch, seq_len

    for l in range(L):
        # Hoisted per-layer loads (time loop is unrolled -> load exactly once).
        wx_l = wx_ref[l]                                   # (H, 4H) bf16
        uh_l = uh_ref[l]                                   # (H, 4H) bf16
        b_l = b_ref[l]                                     # (1, 4H) f32

        # Layer input for ALL timesteps; layer 0 reads the embedded sequence,
        # deeper layers read the previous layer's stacked hidden states.
        if l == 0:
            x_all = x_ref[...]                             # (T*B, H) bf16
        else:
            x_all = hbuf_ref[...].astype(jnp.bfloat16)     # (T*B, H) bf16

        # Entire input path of the layer in ONE lane-dense MXU matmul.
        pre_x = jnp.dot(x_all, wx_l,
                        preferred_element_type=jnp.float32) + b_l   # (T*B, 4H) f32

        h = jnp.zeros((B, H), jnp.float32)
        c = jnp.zeros((B, H), jnp.float32)
        # T is small & static -> fully unrolled. For long sequences switch to
        # lax.fori_loop over t carrying (h, c) with modest unroll.
        for t in range(T):
            pre = pre_x[t * B:(t + 1) * B, :] + jnp.dot(
                h.astype(jnp.bfloat16), uh_l,
                preferred_element_type=jnp.float32)        # (B, 4H) f32
            # Two activations per layer-step: sigmoid over contiguous [f,i,o],
            # tanh over g.
            sig = jax.nn.sigmoid(pre[:, :3 * H])
            g = jnp.tanh(pre[:, 3 * H:])
            f = sig[:, :H]
            i = sig[:, H:2 * H]
            o = sig[:, 2 * H:3 * H]
            c = f * c + i * g                              # f32 elementwise
            h = o * jnp.tanh(c)
            hbuf_ref[pl.ds(t * B, B), :] = h               # layer output row-block

    # Fused vocab projection: ONE lane-dense (T*B, H) @ (H, Vp) matmul + one
    # unmasked (T*B, Vp) store for every timestep at once.
    h_top = hbuf_ref[...].astype(jnp.bfloat16)
    out_ref[...] = jnp.dot(h_top, wout_ref[...],
                           preferred_element_type=jnp.float32) + bout_ref[...]


def prepare_params(params, *, lane_width=128):
    """One-time layout transform of PyTorch-shaped params for the kernel."""
    bf16 = jnp.bfloat16

    def fuse(prefix):  # -> (L, H, 4H), gate order [f, i, o, c(=g)]
        return jnp.concatenate(
            [params[f"{prefix}_f"], params[f"{prefix}_i"],
             params[f"{prefix}_o"], params[f"{prefix}_c"]], axis=-1)

    b_all = jnp.concatenate(
        [params["b_f"], params["b_i"], params["b_o"], params["b_c"]], axis=-1)

    H, V = params["W_out"].shape
    Vp = max(lane_width, ((V + lane_width - 1) // lane_width) * lane_width)
    w_out_p = jnp.zeros((H, Vp), bf16).at[:, :V].set(params["W_out"].astype(bf16))
    b_out_p = jnp.zeros((1, Vp), jnp.float32).at[0, :V].set(
        params["b_out"].astype(jnp.float32))

    return {
        "embedding": params["embedding"].astype(bf16),                 # (V, H) bf16
        "wx": fuse("W").astype(bf16),                                  # (L, H, 4H)
        "uh": fuse("U").astype(bf16),                                  # (L, H, 4H)
        "b": b_all[:, None, :].astype(jnp.float32),                    # (L, 1, 4H)
        "w_out": w_out_p,                                              # (H, Vp)
        "b_out": b_out_p,                                              # (1, Vp)
        "vocab_size": V,
    }


def lstm_by_hand_forward(input_seq, prepared):
    """Pallas forward of LSTMbyHand. input_seq: (B, T) int32 -> (B, T, V) f32."""
    B, T = input_seq.shape
    L, H, _ = prepared["wx"].shape
    Vp = prepared["w_out"].shape[1]
    V = prepared["vocab_size"]

    # Embedding gather (wrapper glue), time-major, already bf16.
    x_tb = prepared["embedding"][jnp.transpose(input_seq)].reshape(T * B, H)

    # Whole problem fits trivially in VMEM at these sizes -> no grid, one call.
    logits_padded = pl.pallas_call(
        functools.partial(_lstm_fused_kernel, batch=B, seq_len=T),
        out_shape=jax.ShapeDtypeStruct((T * B, Vp), jnp.float32),
        scratch_shapes=[pltpu.VMEM((T * B, H), jnp.float32)],
    )(x_tb, prepared["wx"], prepared["uh"], prepared["b"],
      prepared["w_out"], prepared["b_out"])

    # Layout glue back to the module's (B, T, V).
    logits = logits_padded.reshape(T, B, Vp)[:, :, :V]
    return jnp.transpose(logits, (1, 0, 2))


def reference_forward(input_seq, params, *, hidden_size, num_layers):
    """Pure-JAX reference with the same math as the PyTorch module.

    Matmul operands are cast to bfloat16 with float32 accumulation to mirror
    the kernel's MXU-native numerics; everything else stays float32.
    """
    B, T = input_seq.shape
    H = hidden_size

    def mm(a, w):
        return jnp.dot(a.astype(jnp.bfloat16), w.astype(jnp.bfloat16),
                       preferred_element_type=jnp.float32)

    emb = params["embedding"][input_seq].astype(jnp.float32)           # (B, T, H)
    h = [jnp.zeros((B, H), jnp.float32) for _ in range(num_layers)]
    c = [jnp.zeros((B, H), jnp.float32) for _ in range(num_layers)]
    outs = []
    for t in range(T):
        x = emb[:, t]
        for l in range(num_layers):
            f = jax.nn.sigmoid(mm(x, params["W_f"][l]) + mm(h[l], params["U_f"][l]) + params["b_f"][l])
            i = jax.nn.sigmoid(mm(x, params["W_i"][l]) + mm(h[l], params["U_i"][l]) + params["b_i"][l])
            g = jnp.tanh(mm(x, params["W_c"][l]) + mm(h[l], params["U_c"][l]) + params["b_c"][l])
            o = jax.nn.sigmoid(mm(x, params["W_o"][l]) + mm(h[l], params["U_o"][l]) + params["b_o"][l])
            c[l] = f * c[l] + i * g
            h[l] = o * jnp.tanh(c[l])
            x = h[l]
        outs.append(mm(x, params["W_out"]) + params["b_out"])
    return jnp.stack(outs, axis=1)                                      # (B, T, V)


def init_params(key, *, vocab_size, hidden_size, num_layers):
    """Params in the PyTorch module's layout (per-gate W/U of shape (H, H))."""
    H, V, L = hidden_size, vocab_size, num_layers
    ks = jax.random.split(key, 15)
    rn = lambda k, shape, scale=1.0: scale * jax.random.normal(k, shape, dtype=jnp.float32)
    return {
        "embedding": rn(ks[0], (V, H)),
        "W_f": rn(ks[1], (L, H, H), 0.3), "U_f": rn(ks[2], (L, H, H), 0.3),
        "W_i": rn(ks[3], (L, H, H), 0.3), "U_i": rn(ks[4], (L, H, H), 0.3),
        "W_c": rn(ks[5], (L, H, H), 0.3), "U_c": rn(ks[6], (L, H, H), 0.3),
        "W_o": rn(ks[7], (L, H, H), 0.3), "U_o": rn(ks[8], (L, H, H), 0.3),
        # The module initializes gate biases to zero; use small nonzero values
        # here so the fused-bias path is actually exercised by the check.
        "b_f": rn(ks[9], (L, H), 0.1), "b_i": rn(ks[10], (L, H), 0.1),
        "b_c": rn(ks[11], (L, H), 0.1), "b_o": rn(ks[12], (L, H), 0.1),
        # fc_out: Linear(H, V) stored as (H, V) so y = x @ W_out + b_out.
        "W_out": rn(ks[13], (H, V), 0.1),
        "b_out": rn(ks[14], (V,), 0.1),
    }


if __name__ == "__main__":
    batch, seq_len = 2, 8
    hidden_size, vocab_size, num_layers = 32, 16, 2

    key = jax.random.PRNGKey(0)
    pkey, dkey = jax.random.split(key)
    params = init_params(pkey, vocab_size=vocab_size, hidden_size=hidden_size,
                         num_layers=num_layers)
    prepared = prepare_params(params)
    input_seq = jax.random.randint(dkey, (batch, seq_len), 0, vocab_size, dtype=jnp.int32)

    out = lstm_by_hand_forward(input_seq, prepared)
    out = jax.block_until_ready(out)

    ref = reference_forward(input_seq, params, hidden_size=hidden_size,
                            num_layers=num_layers)
    assert out.shape == (batch, seq_len, vocab_size)
    max_err = float(jnp.max(jnp.abs(out - ref)))
    assert jnp.allclose(out, ref, atol=2e-2, rtol=2e-2), \
        f"mismatch vs reference (max_err={max_err})"
    print("KERNEL_OK")
</pallas_src>

<mosaic_0001>
module attributes {stable_mosaic.version = 11 : i64} {
  func.func @_lstm_fused_kernel(%arg0: memref<16x32xbf16, #tpu.memory_space<vmem>>, %arg1: memref<2x32x128xbf16, #tpu.memory_space<vmem>>, %arg2: memref<2x32x128xbf16, #tpu.memory_space<vmem>>, %arg3: memref<2x1x128xf32, #tpu.memory_space<vmem>>, %arg4: memref<32x128xbf16, #tpu.memory_space<vmem>>, %arg5: memref<1x128xf32, #tpu.memory_space<vmem>>, %arg6: memref<16x128xf32, #tpu.memory_space<vmem>>, %arg7: memref<16x32xf32, #tpu.memory_space<vmem>>) attributes {dimension_semantics = [], scalar_prefetch = 0 : i64, scratch_operands = 1 : i64, tpu.core_type = #tpu.core_type<tc>} {
    %c0 = arith.constant 0 : index
    %c0_0 = arith.constant 0 : index
    %c0_1 = arith.constant 0 : index
    %0 = vector.load %arg1[%c0, %c0_0, %c0_1] : memref<2x32x128xbf16, #tpu.memory_space<vmem>>, vector<1x32x128xbf16>
    %1 = vector.shape_cast %0 : vector<1x32x128xbf16> to vector<32x128xbf16>
    %c0_2 = arith.constant 0 : index
    %c0_3 = arith.constant 0 : index
    %c0_4 = arith.constant 0 : index
    %2 = vector.load %arg2[%c0_2, %c0_3, %c0_4] : memref<2x32x128xbf16, #tpu.memory_space<vmem>>, vector<1x32x128xbf16>
    %3 = vector.shape_cast %2 : vector<1x32x128xbf16> to vector<32x128xbf16>
    %c0_5 = arith.constant 0 : index
    %c0_6 = arith.constant 0 : index
    %c0_7 = arith.constant 0 : index
    %4 = vector.load %arg3[%c0_5, %c0_6, %c0_7] : memref<2x1x128xf32, #tpu.memory_space<vmem>>, vector<1x1x128xf32>
    %5 = vector.shape_cast %4 : vector<1x1x128xf32> to vector<1x128xf32>
    %c0_8 = arith.constant 0 : index
    %c0_9 = arith.constant 0 : index
    %6 = vector.load %arg0[%c0_8, %c0_9] : memref<16x32xbf16, #tpu.memory_space<vmem>>, vector<16x32xbf16>
    %cst = arith.constant dense<0.000000e+00> : vector<16x128xf32>
    %7 = tpu.matmul %6, %1, %cst {dimension_numbers = #tpu.dot_dimension_numbers<[1], [0], [0], [1], [0, 0, 1, 1], [], []>} : vector<16x32xbf16>, vector<32x128xbf16>, vector<16x128xf32> -> vector<16x128xf32>
    %8 = vector.broadcast %5 : vector<1x128xf32> to vector<16x128xf32>
    %9 = arith.addf %7, %8 : vector<16x128xf32>
    %cst_10 = arith.constant 0.000000e+00 : f32
    %10 = vector.broadcast %cst_10 : f32 to vector<2x32xf32>
    %cst_11 = arith.constant 0.000000e+00 : f32
    %11 = vector.broadcast %cst_11 : f32 to vector<2x32xf32>
    %12 = vector.extract_strided_slice %9 {offsets = [0, 0], sizes = [2, 128], strides = [1, 1]} : vector<16x128xf32> to vector<2x128xf32>
    %13 = arith.truncf %10 : vector<2x32xf32> to vector<2x32xbf16>
    %cst_12 = arith.constant dense<0.000000e+00> : vector<2x128xf32>
    %14 = tpu.matmul %13, %3, %cst_12 {dimension_numbers = #tpu.dot_dimension_numbers<[1], [0], [0], [1], [0, 0, 1, 1], [], []>} : vector<2x32xbf16>, vector<32x128xbf16>, vector<2x128xf32> -> vector<2x128xf32>
    %15 = arith.addf %12, %14 : vector<2x128xf32>
    %16 = vector.extract_strided_slice %15 {offsets = [0, 0], sizes = [2, 96], strides = [1, 1]} : vector<2x128xf32> to vector<2x96xf32>
    %17 = arith.negf %16 : vector<2x96xf32>
    %18 = math.exp %17 : vector<2x96xf32>
    %cst_13 = arith.constant 1.000000e+00 : f32
    %19 = vector.broadcast %cst_13 : f32 to vector<2x96xf32>
    %20 = arith.addf %19, %18 : vector<2x96xf32>
    %21 = arith.divf %19, %20 : vector<2x96xf32>
    %22 = vector.extract_strided_slice %15 {offsets = [0, 96], sizes = [2, 32], strides = [1, 1]} : vector<2x128xf32> to vector<2x32xf32>
    %23 = math.tanh %22 : vector<2x32xf32>
    %24 = vector.extract_strided_slice %21 {offsets = [0, 0], sizes = [2, 32], strides = [1, 1]} : vector<2x96xf32> to vector<2x32xf32>
    %25 = vector.extract_strided_slice %21 {offsets = [0, 32], sizes = [2, 32], strides = [1, 1]} : vector<2x96xf32> to vector<2x32xf32>
    %26 = vector.extract_strided_slice %21 {offsets = [0, 64], sizes = [2, 32], strides = [1, 1]} : vector<2x96xf32> to vector<2x32xf32>
    %27 = arith.mulf %24, %11 : vector<2x32xf32>
    %28 = arith.mulf %25, %23 : vector<2x32xf32>
    %29 = arith.addf %27, %28 : vector<2x32xf32>
    %30 = math.tanh %29 : vector<2x32xf32>
    %31 = arith.mulf %26, %30 : vector<2x32xf32>
    %c0_14 = arith.constant 0 : index
    %c0_15 = arith.constant 0 : index
    %32 = vector.load %arg7[%c0_14, %c0_15] : memref<16x32xf32, #tpu.memory_space<vmem>>, vector<2x32xf32>
    tpu.vector_store %arg7[%c0_14, %c0_15], %31 {strides = array<i32>} : memref<16x32xf32, #tpu.memory_space<vmem>>, vector<2x32xf32>,
    %33 = vector.extract_strided_slice %9 {offsets = [2, 0], sizes = [2, 128], strides = [1, 1]} : vector<16x128xf32> to vector<2x128xf32>
    %34 = arith.truncf %31 : vector<2x32xf32> to vector<2x32xbf16>
    %cst_16 = arith.constant dense<0.000000e+00> : vector<2x128xf32>
    %35 = tpu.matmul %34, %3, %cst_16 {dimension_numbers = #tpu.dot_dimension_numbers<[1], [0], [0], [1], [0, 0, 1, 1], [], []>} : vector<2x32xbf16>, vector<32x128xbf16>, vector<2x128xf32> -> vector<2x128xf32>
    %36 = arith.addf %33, %35 : vector<2x128xf32>
    %37 = vector.extract_strided_slice %36 {offsets = [0, 0], sizes = [2, 96], strides = [1, 1]} : vector<2x128xf32> to vector<2x96xf32>
    %38 = arith.negf %37 : vector<2x96xf32>
    %39 = math.exp %38 : vector<2x96xf32>
    %cst_17 = arith.constant 1.000000e+00 : f32
    %40 = vector.broadcast %cst_17 : f32 to vector<2x96xf32>
    %41 = arith.addf %40, %39 : vector<2x96xf32>
    %42 = arith.divf %40, %41 : vector<2x96xf32>
    %43 = vector.extract_strided_slice %36 {offsets = [0, 96], sizes = [2, 32], strides = [1, 1]} : vector<2x128xf32> to vector<2x32xf32>
    %44 = math.tanh %43 : vector<2x32xf32>
    %45 = vector.extract_strided_slice %42 {offsets = [0, 0], sizes = [2, 32], strides = [1, 1]} : vector<2x96xf32> to vector<2x32xf32>
    %46 = vector.extract_strided_slice %42 {offsets = [0, 32], sizes = [2, 32], strides = [1, 1]} : vector<2x96xf32> to vector<2x32xf32>
    %47 = vector.extract_strided_slice %42 {offsets = [0, 64], sizes = [2, 32], strides = [1, 1]} : vector<2x96xf32> to vector<2x32xf32>
    %48 = arith.mulf %45, %29 : vector<2x32xf32>
    %49 = arith.mulf %46, %44 : vector<2x32xf32>
    %50 = arith.addf %48, %49 : vector<2x32xf32>
    %51 = math.tanh %50 : vector<2x32xf32>
    %52 = arith.mulf %47, %51 : vector<2x32xf32>
    %c2 = arith.constant 2 : index
    %c0_18 = arith.constant 0 : index
    %53 = vector.load %arg7[%c2, %c0_18] : memref<16x32xf32, #tpu.memory_space<vmem>>, vector<2x32xf32>
    tpu.vector_store %arg7[%c2, %c0_18], %52 {strides = array<i32>} : memref<16x32xf32, #tpu.memory_space<vmem>>, vector<2x32xf32>,
    %54 = vector.extract_strided_slice %9 {offsets = [4, 0], sizes = [2, 128], strides = [1, 1]} : vector<16x128xf32> to vector<2x128xf32>
    %55 = arith.truncf %52 : vector<2x32xf32> to vector<2x32xbf16>
    %cst_19 = arith.constant dense<0.000000e+00> : vector<2x128xf32>
    %56 = tpu.matmul %55, %3, %cst_19 {dimension_numbers = #tpu.dot_dimension_numbers<[1], [0], [0], [1], [0, 0, 1, 1], [], []>} : vector<2x32xbf16>, vector<32x128xbf16>, vector<2x128xf32> -> vector<2x128xf32>
    %57 = arith.addf %54, %56 : vector<2x128xf32>
    %58 = vector.extract_strided_slice %57 {offsets = [0, 0], sizes = [2, 96], strides = [1, 1]} : vector<2x128xf32> to vector<2x96xf32>
    %59 = arith.negf %58 : vector<2x96xf32>
    %60 = math.exp %59 : vector<2x96xf32>
    %cst_20 = arith.constant 1.000000e+00 : f32
    %61 = vector.broadcast %cst_20 : f32 to vector<2x96xf32>
    %62 = arith.addf %61, %60 : vector<2x96xf32>
    %63 = arith.divf %61, %62 : vector<2x96xf32>
    %64 = vector.extract_strided_slice %57 {offsets = [0, 96], sizes = [2, 32], strides = [1, 1]} : vector<2x128xf32> to vector<2x32xf32>
    %65 = math.tanh %64 : vector<2x32xf32>
    %66 = vector.extract_strided_slice %63 {offsets = [0, 0], sizes = [2, 32], strides = [1, 1]} : vector<2x96xf32> to vector<2x32xf32>
    %67 = vector.extract_strided_slice %63 {offsets = [0, 32], sizes = [2, 32], strides = [1, 1]} : vector<2x96xf32> to vector<2x32xf32>
    %68 = vector.extract_strided_slice %63 {offsets = [0, 64], sizes = [2, 32], strides = [1, 1]} : vector<2x96xf32> to vector<2x32xf32>
    %69 = arith.mulf %66, %50 : vector<2x32xf32>
    %70 = arith.mulf %67, %65 : vector<2x32xf32>
    %71 = arith.addf %69, %70 : vector<2x32xf32>
    %72 = math.tanh %71 : vector<2x32xf32>
    %73 = arith.mulf %68, %72 : vector<2x32xf32>
    %c4 = arith.constant 4 : index
    %c0_21 = arith.constant 0 : index
    %74 = vector.load %arg7[%c4, %c0_21] : memref<16x32xf32, #tpu.memory_space<vmem>>, vector<2x32xf32>
    tpu.vector_store %arg7[%c4, %c0_21], %73 {strides = array<i32>} : memref<16x32xf32, #tpu.memory_space<vmem>>, vector<2x32xf32>,
    %75 = vector.extract_strided_slice %9 {offsets = [6, 0], sizes = [2, 128], strides = [1, 1]} : vector<16x128xf32> to vector<2x128xf32>
    %76 = arith.truncf %73 : vector<2x32xf32> to vector<2x32xbf16>
    %cst_22 = arith.constant dense<0.000000e+00> : vector<2x128xf32>
    %77 = tpu.matmul %76, %3, %cst_22 {dimension_numbers = #tpu.dot_dimension_numbers<[1], [0], [0], [1], [0, 0, 1, 1], [], []>} : vector<2x32xbf16>, vector<32x128xbf16>, vector<2x128xf32> -> vector<2x128xf32>
    %78 = arith.addf %75, %77 : vector<2x128xf32>
    %79 = vector.extract_strided_slice %78 {offsets = [0, 0], sizes = [2, 96], strides = [1, 1]} : vector<2x128xf32> to vector<2x96xf32>
    %80 = arith.negf %79 : vector<2x96xf32>
    %81 = math.exp %80 : vector<2x96xf32>
    %cst_23 = arith.constant 1.000000e+00 : f32
    %82 = vector.broadcast %cst_23 : f32 to vector<2x96xf32>
    %83 = arith.addf %82, %81 : vector<2x96xf32>
    %84 = arith.divf %82, %83 : vector<2x96xf32>
    %85 = vector.extract_strided_slice %78 {offsets = [0, 96], sizes = [2, 32], strides = [1, 1]} : vector<2x128xf32> to vector<2x32xf32>
    %86 = math.tanh %85 : vector<2x32xf32>
    %87 = vector.extract_strided_slice %84 {offsets = [0, 0], sizes = [2, 32], strides = [1, 1]} : vector<2x96xf32> to vector<2x32xf32>
    %88 = vector.extract_strided_slice %84 {offsets = [0, 32], sizes = [2, 32], strides = [1, 1]} : vector<2x96xf32> to vector<2x32xf32>
    %89 = vector.extract_strided_slice %84 {offsets = [0, 64], sizes = [2, 32], strides = [1, 1]} : vector<2x96xf32> to vector<2x32xf32>
    %90 = arith.mulf %87, %71 : vector<2x32xf32>
    %91 = arith.mulf %88, %86 : vector<2x32xf32>
    %92 = arith.addf %90, %91 : vector<2x32xf32>
    %93 = math.tanh %92 : vector<2x32xf32>
    %94 = arith.mulf %89, %93 : vector<2x32xf32>
    %c6 = arith.constant 6 : index
    %c0_24 = arith.constant 0 : index
    %95 = vector.load %arg7[%c6, %c0_24] : memref<16x32xf32, #tpu.memory_space<vmem>>, vector<2x32xf32>
    tpu.vector_store %arg7[%c6, %c0_24], %94 {strides = array<i32>} : memref<16x32xf32, #tpu.memory_space<vmem>>, vector<2x32xf32>,
    %96 = vector.extract_strided_slice %9 {offsets = [8, 0], sizes = [2, 128], strides = [1, 1]} : vector<16x128xf32> to vector<2x128xf32>
    %97 = arith.truncf %94 : vector<2x32xf32> to vector<2x32xbf16>
    %cst_25 = arith.constant dense<0.000000e+00> : vector<2x128xf32>
    %98 = tpu.matmul %97, %3, %cst_25 {dimension_numbers = #tpu.dot_dimension_numbers<[1], [0], [0], [1], [0, 0, 1, 1], [], []>} : vector<2x32xbf16>, vector<32x128xbf16>, vector<2x128xf32> -> vector<2x128xf32>
    %99 = arith.addf %96, %98 : vector<2x128xf32>
    %100 = vector.extract_strided_slice %99 {offsets = [0, 0], sizes = [2, 96], strides = [1, 1]} : vector<2x128xf32> to vector<2x96xf32>
    %101 = arith.negf %100 : vector<2x96xf32>
    %102 = math.exp %101 : vector<2x96xf32>
    %cst_26 = arith.constant 1.000000e+00 : f32
    %103 = vector.broadcast %cst_26 : f32 to vector<2x96xf32>
    %104 = arith.addf %103, %102 : vector<2x96xf32>
    %105 = arith.divf %103, %104 : vector<2x96xf32>
    %106 = vector.extract_strided_slice %99 {offsets = [0, 96], sizes = [2, 32], strides = [1, 1]} : vector<2x128xf32> to vector<2x32xf32>
    %107 = math.tanh %106 : vector<2x32xf32>
    %108 = vector.extract_strided_slice %105 {offsets = [0, 0], sizes = [2, 32], strides = [1, 1]} : vector<2x96xf32> to vector<2x32xf32>
    %109 = vector.extract_strided_slice %105 {offsets = [0, 32], sizes = [2, 32], strides = [1, 1]} : vector<2x96xf32> to vector<2x32xf32>
    %110 = vector.extract_strided_slice %105 {offsets = [0, 64], sizes = [2, 32], strides = [1, 1]} : vector<2x96xf32> to vector<2x32xf32>
    %111 = arith.mulf %108, %92 : vector<2x32xf32>
    %112 = arith.mulf %109, %107 : vector<2x32xf32>
    %113 = arith.addf %111, %112 : vector<2x32xf32>
    %114 = math.tanh %113 : vector<2x32xf32>
    %115 = arith.mulf %110, %114 : vector<2x32xf32>
    %c8 = arith.constant 8 : index
    %c0_27 = arith.constant 0 : index
    %116 = vector.load %arg7[%c8, %c0_27] : memref<16x32xf32, #tpu.memory_space<vmem>>, vector<2x32xf32>
    tpu.vector_store %arg7[%c8, %c0_27], %115 {strides = array<i32>} : memref<16x32xf32, #tpu.memory_space<vmem>>, vector<2x32xf32>,
    %117 = vector.extract_strided_slice %9 {offsets = [10, 0], sizes = [2, 128], strides = [1, 1]} : vector<16x128xf32> to vector<2x128xf32>
    %118 = arith.truncf %115 : vector<2x32xf32> to vector<2x32xbf16>
    %cst_28 = arith.constant dense<0.000000e+00> : vector<2x128xf32>
    %119 = tpu.matmul %118, %3, %cst_28 {dimension_numbers = #tpu.dot_dimension_numbers<[1], [0], [0], [1], [0, 0, 1, 1], [], []>} : vector<2x32xbf16>, vector<32x128xbf16>, vector<2x128xf32> -> vector<2x128xf32>
    %120 = arith.addf %117, %119 : vector<2x128xf32>
    %121 = vector.extract_strided_slice %120 {offsets = [0, 0], sizes = [2, 96], strides = [1, 1]} : vector<2x128xf32> to vector<2x96xf32>
    %122 = arith.negf %121 : vector<2x96xf32>
    %123 = math.exp %122 : vector<2x96xf32>
    %cst_29 = arith.constant 1.000000e+00 : f32
    %124 = vector.broadcast %cst_29 : f32 to vector<2x96xf32>
    %125 = arith.addf %124, %123 : vector<2x96xf32>
    %126 = arith.divf %124, %125 : vector<2x96xf32>
    %127 = vector.extract_strided_slice %120 {offsets = [0, 96], sizes = [2, 32], strides = [1, 1]} : vector<2x128xf32> to vector<2x32xf32>
    %128 = math.tanh %127 : vector<2x32xf32>
    %129 = vector.extract_strided_slice %126 {offsets = [0, 0], sizes = [2, 32], strides = [1, 1]} : vector<2x96xf32> to vector<2x32xf32>
    %130 = vector.extract_strided_slice %126 {offsets = [0, 32], sizes = [2, 32], strides = [1, 1]} : vector<2x96xf32> to vector<2x32xf32>
    %131 = vector.extract_strided_slice %126 {offsets = [0, 64], sizes = [2, 32], strides = [1, 1]} : vector<2x96xf32> to vector<2x32xf32>
    %132 = arith.mulf %129, %113 : vector<2x32xf32>
    %133 = arith.mulf %130, %128 : vector<2x32xf32>
    %134 = arith.addf %132, %133 : vector<2x32xf32>
    %135 = math.tanh %134 : vector<2x32xf32>
    %136 = arith.mulf %131, %135 : vector<2x32xf32>
    %c10 = arith.constant 10 : index
    %c0_30 = arith.constant 0 : index
    %137 = vector.load %arg7[%c10, %c0_30] : memref<16x32xf32, #tpu.memory_space<vmem>>, vector<2x32xf32>
    tpu.vector_store %arg7[%c10, %c0_30], %136 {strides = array<i32>} : memref<16x32xf32, #tpu.memory_space<vmem>>, vector<2x32xf32>,
    %138 = vector.extract_strided_slice %9 {offsets = [12, 0], sizes = [2, 128], strides = [1, 1]} : vector<16x128xf32> to vector<2x128xf32>
    %139 = arith.truncf %136 : vector<2x32xf32> to vector<2x32xbf16>
    %cst_31 = arith.constant dense<0.000000e+00> : vector<2x128xf32>
    %140 = tpu.matmul %139, %3, %cst_31 {dimension_numbers = #tpu.dot_dimension_numbers<[1], [0], [0], [1], [0, 0, 1, 1], [], []>} : vector<2x32xbf16>, vector<32x128xbf16>, vector<2x128xf32> -> vector<2x128xf32>
    %141 = arith.addf %138, %140 : vector<2x128xf32>
    %142 = vector.extract_strided_slice %141 {offsets = [0, 0], sizes = [2, 96], strides = [1, 1]} : vector<2x128xf32> to vector<2x96xf32>
    %143 = arith.negf %142 : vector<2x96xf32>
    %144 = math.exp %143 : vector<2x96xf32>
    %cst_32 = arith.constant 1.000000e+00 : f32
    %145 = vector.broadcast %cst_32 : f32 to vector<2x96xf32>
    %146 = arith.addf %145, %144 : vector<2x96xf32>
    %147 = arith.divf %145, %146 : vector<2x96xf32>
    %148 = vector.extract_strided_slice %141 {offsets = [0, 96], sizes = [2, 32], strides = [1, 1]} : vector<2x128xf32> to vector<2x32xf32>
    %149 = math.tanh %148 : vector<2x32xf32>
    %150 = vector.extract_strided_slice %147 {offsets = [0, 0], sizes = [2, 32], strides = [1, 1]} : vector<2x96xf32> to vector<2x32xf32>
    %151 = vector.extract_strided_slice %147 {offsets = [0, 32], sizes = [2, 32], strides = [1, 1]} : vector<2x96xf32> to vector<2x32xf32>
    %152 = vector.extract_strided_slice %147 {offsets = [0, 64], sizes = [2, 32], strides = [1, 1]} : vector<2x96xf32> to vector<2x32xf32>
    %153 = arith.mulf %150, %134 : vector<2x32xf32>
    %154 = arith.mulf %151, %149 : vector<2x32xf32>
    %155 = arith.addf %153, %154 : vector<2x32xf32>
    %156 = math.tanh %155 : vector<2x32xf32>
    %157 = arith.mulf %152, %156 : vector<2x32xf32>
    %c12 = arith.constant 12 : index
    %c0_33 = arith.constant 0 : index
    %158 = vector.load %arg7[%c12, %c0_33] : memref<16x32xf32, #tpu.memory_space<vmem>>, vector<2x32xf32>
    tpu.vector_store %arg7[%c12, %c0_33], %157 {strides = array<i32>} : memref<16x32xf32, #tpu.memory_space<vmem>>, vector<2x32xf32>,
    %159 = vector.extract_strided_slice %9 {offsets = [14, 0], sizes = [2, 128], strides = [1, 1]} : vector<16x128xf32> to vector<2x128xf32>
    %160 = arith.truncf %157 : vector<2x32xf32> to vector<2x32xbf16>
    %cst_34 = arith.constant dense<0.000000e+00> : vector<2x128xf32>
    %161 = tpu.matmul %160, %3, %cst_34 {dimension_numbers = #tpu.dot_dimension_numbers<[1], [0], [0], [1], [0, 0, 1, 1], [], []>} : vector<2x32xbf16>, vector<32x128xbf16>, vector<2x128xf32> -> vector<2x128xf32>
    %162 = arith.addf %159, %161 : vector<2x128xf32>
    %163 = vector.extract_strided_slice %162 {offsets = [0, 0], sizes = [2, 96], strides = [1, 1]} : vector<2x128xf32> to vector<2x96xf32>
    %164 = arith.negf %163 : vector<2x96xf32>
    %165 = math.exp %164 : vector<2x96xf32>
    %cst_35 = arith.constant 1.000000e+00 : f32
    %166 = vector.broadcast %cst_35 : f32 to vector<2x96xf32>
    %167 = arith.addf %166, %165 : vector<2x96xf32>
    %168 = arith.divf %166, %167 : vector<2x96xf32>
    %169 = vector.extract_strided_slice %162 {offsets = [0, 96], sizes = [2, 32], strides = [1, 1]} : vector<2x128xf32> to vector<2x32xf32>
    %170 = math.tanh %169 : vector<2x32xf32>
    %171 = vector.extract_strided_slice %168 {offsets = [0, 0], sizes = [2, 32], strides = [1, 1]} : vector<2x96xf32> to vector<2x32xf32>
    %172 = vector.extract_strided_slice %168 {offsets = [0, 32], sizes = [2, 32], strides = [1, 1]} : vector<2x96xf32> to vector<2x32xf32>
    %173 = vector.extract_strided_slice %168 {offsets = [0, 64], sizes = [2, 32], strides = [1, 1]} : vector<2x96xf32> to vector<2x32xf32>
    %174 = arith.mulf %171, %155 : vector<2x32xf32>
    %175 = arith.mulf %172, %170 : vector<2x32xf32>
    %176 = arith.addf %174, %175 : vector<2x32xf32>
    %177 = math.tanh %176 : vector<2x32xf32>
    %178 = arith.mulf %173, %177 : vector<2x32xf32>
    %c14 = arith.constant 14 : index
    %c0_36 = arith.constant 0 : index
    %179 = vector.load %arg7[%c14, %c0_36] : memref<16x32xf32, #tpu.memory_space<vmem>>, vector<2x32xf32>
    tpu.vector_store %arg7[%c14, %c0_36], %178 {strides = array<i32>} : memref<16x32xf32, #tpu.memory_space<vmem>>, vector<2x32xf32>,
    %c1 = arith.constant 1 : index
    %c0_37 = arith.constant 0 : index
    %c0_38 = arith.constant 0 : index
    %180 = vector.load %arg1[%c1, %c0_37, %c0_38] : memref<2x32x128xbf16, #tpu.memory_space<vmem>>, vector<1x32x128xbf16>
    %181 = vector.shape_cast %180 : vector<1x32x128xbf16> to vector<32x128xbf16>
    %c1_39 = arith.constant 1 : index
    %c0_40 = arith.constant 0 : index
    %c0_41 = arith.constant 0 : index
    %182 = vector.load %arg2[%c1_39, %c0_40, %c0_41] : memref<2x32x128xbf16, #tpu.memory_space<vmem>>, vector<1x32x128xbf16>
    %183 = vector.shape_cast %182 : vector<1x32x128xbf16> to vector<32x128xbf16>
    %c1_42 = arith.constant 1 : index
    %c0_43 = arith.constant 0 : index
    %c0_44 = arith.constant 0 : index
    %184 = vector.load %arg3[%c1_42, %c0_43, %c0_44] : memref<2x1x128xf32, #tpu.memory_space<vmem>>, vector<1x1x128xf32>
    %185 = vector.shape_cast %184 : vector<1x1x128xf32> to vector<1x128xf32>
    %c0_45 = arith.constant 0 : index
    %c0_46 = arith.constant 0 : index
    %186 = vector.load %arg7[%c0_45, %c0_46] : memref<16x32xf32, #tpu.memory_space<vmem>>, vector<16x32xf32>
    %187 = arith.truncf %186 : vector<16x32xf32> to vector<16x32xbf16>
    %cst_47 = arith.constant dense<0.000000e+00> : vector<16x128xf32>
    %188 = tpu.matmul %187, %181, %cst_47 {dimension_numbers = #tpu.dot_dimension_numbers<[1], [0], [0], [1], [0, 0, 1, 1], [], []>} : vector<16x32xbf16>, vector<32x128xbf16>, vector<16x128xf32> -> vector<16x128xf32>
    %189 = vector.broadcast %185 : vector<1x128xf32> to vector<16x128xf32>
    %190 = arith.addf %188, %189 : vector<16x128xf32>
    %cst_48 = arith.constant 0.000000e+00 : f32
    %191 = vector.broadcast %cst_48 : f32 to vector<2x32xf32>
    %cst_49 = arith.constant 0.000000e+00 : f32
    %192 = vector.broadcast %cst_49 : f32 to vector<2x32xf32>
    %193 = vector.extract_strided_slice %190 {offsets = [0, 0], sizes = [2, 128], strides = [1, 1]} : vector<16x128xf32> to vector<2x128xf32>
    %194 = arith.truncf %191 : vector<2x32xf32> to vector<2x32xbf16>
    %cst_50 = arith.constant dense<0.000000e+00> : vector<2x128xf32>
    %195 = tpu.matmul %194, %183, %cst_50 {dimension_numbers = #tpu.dot_dimension_numbers<[1], [0], [0], [1], [0, 0, 1, 1], [], []>} : vector<2x32xbf16>, vector<32x128xbf16>, vector<2x128xf32> -> vector<2x128xf32>
    %196 = arith.addf %193, %195 : vector<2x128xf32>
    %197 = vector.extract_strided_slice %196 {offsets = [0, 0], sizes = [2, 96], strides = [1, 1]} : vector<2x128xf32> to vector<2x96xf32>
    %198 = arith.negf %197 : vector<2x96xf32>
    %199 = math.exp %198 : vector<2x96xf32>
    %cst_51 = arith.constant 1.000000e+00 : f32
    %200 = vector.broadcast %cst_51 : f32 to vector<2x96xf32>
    %201 = arith.addf %200, %199 : vector<2x96xf32>
    %202 = arith.divf %200, %201 : vector<2x96xf32>
    %203 = vector.extract_strided_slice %196 {offsets = [0, 96], sizes = [2, 32], strides = [1, 1]} : vector<2x128xf32> to vector<2x32xf32>
    %204 = math.tanh %203 : vector<2x32xf32>
    %205 = vector.extract_strided_slice %202 {offsets = [0, 0], sizes = [2, 32], strides = [1, 1]} : vector<2x96xf32> to vector<2x32xf32>
    %206 = vector.extract_strided_slice %202 {offsets = [0, 32], sizes = [2, 32], strides = [1, 1]} : vector<2x96xf32> to vector<2x32xf32>
    %207 = vector.extract_strided_slice %202 {offsets = [0, 64], sizes = [2, 32], strides = [1, 1]} : vector<2x96xf32> to vector<2x32xf32>
    %208 = arith.mulf %205, %192 : vector<2x32xf32>
    %209 = arith.mulf %206, %204 : vector<2x32xf32>
    %210 = arith.addf %208, %209 : vector<2x32xf32>
    %211 = math.tanh %210 : vector<2x32xf32>
    %212 = arith.mulf %207, %211 : vector<2x32xf32>
    %c0_52 = arith.constant 0 : index
    %c0_53 = arith.constant 0 : index
    %213 = vector.load %arg7[%c0_52, %c0_53] : memref<16x32xf32, #tpu.memory_space<vmem>>, vector<2x32xf32>
    tpu.vector_store %arg7[%c0_52, %c0_53], %212 {strides = array<i32>} : memref<16x32xf32, #tpu.memory_space<vmem>>, vector<2x32xf32>,
    %214 = vector.extract_strided_slice %190 {offsets = [2, 0], sizes = [2, 128], strides = [1, 1]} : vector<16x128xf32> to vector<2x128xf32>
    %215 = arith.truncf %212 : vector<2x32xf32> to vector<2x32xbf16>
    %cst_54 = arith.constant dense<0.000000e+00> : vector<2x128xf32>
    %216 = tpu.matmul %215, %183, %cst_54 {dimension_numbers = #tpu.dot_dimension_numbers<[1], [0], [0], [1], [0, 0, 1, 1], [], []>} : vector<2x32xbf16>, vector<32x128xbf16>, vector<2x128xf32> -> vector<2x128xf32>
    %217 = arith.addf %214, %216 : vector<2x128xf32>
    %218 = vector.extract_strided_slice %217 {offsets = [0, 0], sizes = [2, 96], strides = [1, 1]} : vector<2x128xf32> to vector<2x96xf32>
    %219 = arith.negf %218 : vector<2x96xf32>
    %220 = math.exp %219 : vector<2x96xf32>
    %cst_55 = arith.constant 1.000000e+00 : f32
    %221 = vector.broadcast %cst_55 : f32 to vector<2x96xf32>
    %222 = arith.addf %221, %220 : vector<2x96xf32>
    %223 = arith.divf %221, %222 : vector<2x96xf32>
    %224 = vector.extract_strided_slice %217 {offsets = [0, 96], sizes = [2, 32], strides = [1, 1]} : vector<2x128xf32> to vector<2x32xf32>
    %225 = math.tanh %224 : vector<2x32xf32>
    %226 = vector.extract_strided_slice %223 {offsets = [0, 0], sizes = [2, 32], strides = [1, 1]} : vector<2x96xf32> to vector<2x32xf32>
    %227 = vector.extract_strided_slice %223 {offsets = [0, 32], sizes = [2, 32], strides = [1, 1]} : vector<2x96xf32> to vector<2x32xf32>
    %228 = vector.extract_strided_slice %223 {offsets = [0, 64], sizes = [2, 32], strides = [1, 1]} : vector<2x96xf32> to vector<2x32xf32>
    %229 = arith.mulf %226, %210 : vector<2x32xf32>
    %230 = arith.mulf %227, %225 : vector<2x32xf32>
    %231 = arith.addf %229, %230 : vector<2x32xf32>
    %232 = math.tanh %231 : vector<2x32xf32>
    %233 = arith.mulf %228, %232 : vector<2x32xf32>
    %c2_56 = arith.constant 2 : index
    %c0_57 = arith.constant 0 : index
    %234 = vector.load %arg7[%c2_56, %c0_57] : memref<16x32xf32, #tpu.memory_space<vmem>>, vector<2x32xf32>
    tpu.vector_store %arg7[%c2_56, %c0_57], %233 {strides = array<i32>} : memref<16x32xf32, #tpu.memory_space<vmem>>, vector<2x32xf32>,
    %235 = vector.extract_strided_slice %190 {offsets = [4, 0], sizes = [2, 128], strides = [1, 1]} : vector<16x128xf32> to vector<2x128xf32>
    %236 = arith.truncf %233 : vector<2x32xf32> to vector<2x32xbf16>
    %cst_58 = arith.constant dense<0.000000e+00> : vector<2x128xf32>
    %237 = tpu.matmul %236, %183, %cst_58 {dimension_numbers = #tpu.dot_dimension_numbers<[1], [0], [0], [1], [0, 0, 1, 1], [], []>} : vector<2x32xbf16>, vector<32x128xbf16>, vector<2x128xf32> -> vector<2x128xf32>
    %238 = arith.addf %235, %237 : vector<2x128xf32>
    %239 = vector.extract_strided_slice %238 {offsets = [0, 0], sizes = [2, 96], strides = [1, 1]} : vector<2x128xf32> to vector<2x96xf32>
    %240 = arith.negf %239 : vector<2x96xf32>
    %241 = math.exp %240 : vector<2x96xf32>
    %cst_59 = arith.constant 1.000000e+00 : f32
    %242 = vector.broadcast %cst_59 : f32 to vector<2x96xf32>
    %243 = arith.addf %242, %241 : vector<2x96xf32>
    %244 = arith.divf %242, %243 : vector<2x96xf32>
    %245 = vector.extract_strided_slice %238 {offsets = [0, 96], sizes = [2, 32], strides = [1, 1]} : vector<2x128xf32> to vector<2x32xf32>
    %246 = math.tanh %245 : vector<2x32xf32>
    %247 = vector.extract_strided_slice %244 {offsets = [0, 0], sizes = [2, 32], strides = [1, 1]} : vector<2x96xf32> to vector<2x32xf32>
    %248 = vector.extract_strided_slice %244 {offsets = [0, 32], sizes = [2, 32], strides = [1, 1]} : vector<2x96xf32> to vector<2x32xf32>
    %249 = vector.extract_strided_slice %244 {offsets = [0, 64], sizes = [2, 32], strides = [1, 1]} : vector<2x96xf32> to vector<2x32xf32>
    %250 = arith.mulf %247, %231 : vector<2x32xf32>
    %251 = arith.mulf %248, %246 : vector<2x32xf32>
    %252 = arith.addf %250, %251 : vector<2x32xf32>
    %253 = math.tanh %252 : vector<2x32xf32>
    %254 = arith.mulf %249, %253 : vector<2x32xf32>
    %c4_60 = arith.constant 4 : index
    %c0_61 = arith.constant 0 : index
    %255 = vector.load %arg7[%c4_60, %c0_61] : memref<16x32xf32, #tpu.memory_space<vmem>>, vector<2x32xf32>
    tpu.vector_store %arg7[%c4_60, %c0_61], %254 {strides = array<i32>} : memref<16x32xf32, #tpu.memory_space<vmem>>, vector<2x32xf32>,
    %256 = vector.extract_strided_slice %190 {offsets = [6, 0], sizes = [2, 128], strides = [1, 1]} : vector<16x128xf32> to vector<2x128xf32>
    %257 = arith.truncf %254 : vector<2x32xf32> to vector<2x32xbf16>
    %cst_62 = arith.constant dense<0.000000e+00> : vector<2x128xf32>
    %258 = tpu.matmul %257, %183, %cst_62 {dimension_numbers = #tpu.dot_dimension_numbers<[1], [0], [0], [1], [0, 0, 1, 1], [], []>} : vector<2x32xbf16>, vector<32x128xbf16>, vector<2x128xf32> -> vector<2x128xf32>
    %259 = arith.addf %256, %258 : vector<2x128xf32>
    %260 = vector.extract_strided_slice %259 {offsets = [0, 0], sizes = [2, 96], strides = [1, 1]} : vector<2x128xf32> to vector<2x96xf32>
    %261 = arith.negf %260 : vector<2x96xf32>
    %262 = math.exp %261 : vector<2x96xf32>
    %cst_63 = arith.constant 1.000000e+00 : f32
    %263 = vector.broadcast %cst_63 : f32 to vector<2x96xf32>
    %264 = arith.addf %263, %262 : vector<2x96xf32>
    %265 = arith.divf %263, %264 : vector<2x96xf32>
    %266 = vector.extract_strided_slice %259 {offsets = [0, 96], sizes = [2, 32], strides = [1, 1]} : vector<2x128xf32> to vector<2x32xf32>
    %267 = math.tanh %266 : vector<2x32xf32>
    %268 = vector.extract_strided_slice %265 {offsets = [0, 0], sizes = [2, 32], strides = [1, 1]} : vector<2x96xf32> to vector<2x32xf32>
    %269 = vector.extract_strided_slice %265 {offsets = [0, 32], sizes = [2, 32], strides = [1, 1]} : vector<2x96xf32> to vector<2x32xf32>
    %270 = vector.extract_strided_slice %265 {offsets = [0, 64], sizes = [2, 32], strides = [1, 1]} : vector<2x96xf32> to vector<2x32xf32>
    %271 = arith.mulf %268, %252 : vector<2x32xf32>
    %272 = arith.mulf %269, %267 : vector<2x32xf32>
    %273 = arith.addf %271, %272 : vector<2x32xf32>
    %274 = math.tanh %273 : vector<2x32xf32>
    %275 = arith.mulf %270, %274 : vector<2x32xf32>
    %c6_64 = arith.constant 6 : index
    %c0_65 = arith.constant 0 : index
    %276 = vector.load %arg7[%c6_64, %c0_65] : memref<16x32xf32, #tpu.memory_space<vmem>>, vector<2x32xf32>
    tpu.vector_store %arg7[%c6_64, %c0_65], %275 {strides = array<i32>} : memref<16x32xf32, #tpu.memory_space<vmem>>, vector<2x32xf32>,
    %277 = vector.extract_strided_slice %190 {offsets = [8, 0], sizes = [2, 128], strides = [1, 1]} : vector<16x128xf32> to vector<2x128xf32>
    %278 = arith.truncf %275 : vector<2x32xf32> to vector<2x32xbf16>
    %cst_66 = arith.constant dense<0.000000e+00> : vector<2x128xf32>
    %279 = tpu.matmul %278, %183, %cst_66 {dimension_numbers = #tpu.dot_dimension_numbers<[1], [0], [0], [1], [0, 0, 1, 1], [], []>} : vector<2x32xbf16>, vector<32x128xbf16>, vector<2x128xf32> -> vector<2x128xf32>
    %280 = arith.addf %277, %279 : vector<2x128xf32>
    %281 = vector.extract_strided_slice %280 {offsets = [0, 0], sizes = [2, 96], strides = [1, 1]} : vector<2x128xf32> to vector<2x96xf32>
    %282 = arith.negf %281 : vector<2x96xf32>
    %283 = math.exp %282 : vector<2x96xf32>
    %cst_67 = arith.constant 1.000000e+00 : f32
    %284 = vector.broadcast %cst_67 : f32 to vector<2x96xf32>
    %285 = arith.addf %284, %283 : vector<2x96xf32>
    %286 = arith.divf %284, %285 : vector<2x96xf32>
    %287 = vector.extract_strided_slice %280 {offsets = [0, 96], sizes = [2, 32], strides = [1, 1]} : vector<2x128xf32> to vector<2x32xf32>
    %288 = math.tanh %287 : vector<2x32xf32>
    %289 = vector.extract_strided_slice %286 {offsets = [0, 0], sizes = [2, 32], strides = [1, 1]} : vector<2x96xf32> to vector<2x32xf32>
    %290 = vector.extract_strided_slice %286 {offsets = [0, 32], sizes = [2, 32], strides = [1, 1]} : vector<2x96xf32> to vector<2x32xf32>
    %291 = vector.extract_strided_slice %286 {offsets = [0, 64], sizes = [2, 32], strides = [1, 1]} : vector<2x96xf32> to vector<2x32xf32>
    %292 = arith.mulf %289, %273 : vector<2x32xf32>
    %293 = arith.mulf %290, %288 : vector<2x32xf32>
    %294 = arith.addf %292, %293 : vector<2x32xf32>
    %295 = math.tanh %294 : vector<2x32xf32>
    %296 = arith.mulf %291, %295 : vector<2x32xf32>
    %c8_68 = arith.constant 8 : index
    %c0_69 = arith.constant 0 : index
    %297 = vector.load %arg7[%c8_68, %c0_69] : memref<16x32xf32, #tpu.memory_space<vmem>>, vector<2x32xf32>
    tpu.vector_store %arg7[%c8_68, %c0_69], %296 {strides = array<i32>} : memref<16x32xf32, #tpu.memory_space<vmem>>, vector<2x32xf32>,
    %298 = vector.extract_strided_slice %190 {offsets = [10, 0], sizes = [2, 128], strides = [1, 1]} : vector<16x128xf32> to vector<2x128xf32>
    %299 = arith.truncf %296 : vector<2x32xf32> to vector<2x32xbf16>
    %cst_70 = arith.constant dense<0.000000e+00> : vector<2x128xf32>
    %300 = tpu.matmul %299, %183, %cst_70 {dimension_numbers = #tpu.dot_dimension_numbers<[1], [0], [0], [1], [0, 0, 1, 1], [], []>} : vector<2x32xbf16>, vector<32x128xbf16>, vector<2x128xf32> -> vector<2x128xf32>
    %301 = arith.addf %298, %300 : vector<2x128xf32>
    %302 = vector.extract_strided_slice %301 {offsets = [0, 0], sizes = [2, 96], strides = [1, 1]} : vector<2x128xf32> to vector<2x96xf32>
    %303 = arith.negf %302 : vector<2x96xf32>
    %304 = math.exp %303 : vector<2x96xf32>
    %cst_71 = arith.constant 1.000000e+00 : f32
    %305 = vector.broadcast %cst_71 : f32 to vector<2x96xf32>
    %306 = arith.addf %305, %304 : vector<2x96xf32>
    %307 = arith.divf %305, %306 : vector<2x96xf32>
    %308 = vector.extract_strided_slice %301 {offsets = [0, 96], sizes = [2, 32], strides = [1, 1]} : vector<2x128xf32> to vector<2x32xf32>
    %309 = math.tanh %308 : vector<2x32xf32>
    %310 = vector.extract_strided_slice %307 {offsets = [0, 0], sizes = [2, 32], strides = [1, 1]} : vector<2x96xf32> to vector<2x32xf32>
    %311 = vector.extract_strided_slice %307 {offsets = [0, 32], sizes = [2, 32], strides = [1, 1]} : vector<2x96xf32> to vector<2x32xf32>
    %312 = vector.extract_strided_slice %307 {offsets = [0, 64], sizes = [2, 32], strides = [1, 1]} : vector<2x96xf32> to vector<2x32xf32>
    %313 = arith.mulf %310, %294 : vector<2x32xf32>
    %314 = arith.mulf %311, %309 : vector<2x32xf32>
    %315 = arith.addf %313, %314 : vector<2x32xf32>
    %316 = math.tanh %315 : vector<2x32xf32>
    %317 = arith.mulf %312, %316 : vector<2x32xf32>
    %c10_72 = arith.constant 10 : index
    %c0_73 = arith.constant 0 : index
    %318 = vector.load %arg7[%c10_72, %c0_73] : memref<16x32xf32, #tpu.memory_space<vmem>>, vector<2x32xf32>
    tpu.vector_store %arg7[%c10_72, %c0_73], %317 {strides = array<i32>} : memref<16x32xf32, #tpu.memory_space<vmem>>, vector<2x32xf32>,
    %319 = vector.extract_strided_slice %190 {offsets = [12, 0], sizes = [2, 128], strides = [1, 1]} : vector<16x128xf32> to vector<2x128xf32>
    %320 = arith.truncf %317 : vector<2x32xf32> to vector<2x32xbf16>
    %cst_74 = arith.constant dense<0.000000e+00> : vector<2x128xf32>
    %321 = tpu.matmul %320, %183, %cst_74 {dimension_numbers = #tpu.dot_dimension_numbers<[1], [0], [0], [1], [0, 0, 1, 1], [], []>} : vector<2x32xbf16>, vector<32x128xbf16>, vector<2x128xf32> -> vector<2x128xf32>
    %322 = arith.addf %319, %321 : vector<2x128xf32>
    %323 = vector.extract_strided_slice %322 {offsets = [0, 0], sizes = [2, 96], strides = [1, 1]} : vector<2x128xf32> to vector<2x96xf32>
    %324 = arith.negf %323 : vector<2x96xf32>
    %325 = math.exp %324 : vector<2x96xf32>
    %cst_75 = arith.constant 1.000000e+00 : f32
    %326 = vector.broadcast %cst_75 : f32 to vector<2x96xf32>
    %327 = arith.addf %326, %325 : vector<2x96xf32>
    %328 = arith.divf %326, %327 : vector<2x96xf32>
    %329 = vector.extract_strided_slice %322 {offsets = [0, 96], sizes = [2, 32], strides = [1, 1]} : vector<2x128xf32> to vector<2x32xf32>
    %330 = math.tanh %329 : vector<2x32xf32>
    %331 = vector.extract_strided_slice %328 {offsets = [0, 0], sizes = [2, 32], strides = [1, 1]} : vector<2x96xf32> to vector<2x32xf32>
    %332 = vector.extract_strided_slice %328 {offsets = [0, 32], sizes = [2, 32], strides = [1, 1]} : vector<2x96xf32> to vector<2x32xf32>
    %333 = vector.extract_strided_slice %328 {offsets = [0, 64], sizes = [2, 32], strides = [1, 1]} : vector<2x96xf32> to vector<2x32xf32>
    %334 = arith.mulf %331, %315 : vector<2x32xf32>
    %335 = arith.mulf %332, %330 : vector<2x32xf32>
    %336 = arith.addf %334, %335 : vector<2x32xf32>
    %337 = math.tanh %336 : vector<2x32xf32>
    %338 = arith.mulf %333, %337 : vector<2x32xf32>
    %c12_76 = arith.constant 12 : index
    %c0_77 = arith.constant 0 : index
    %339 = vector.load %arg7[%c12_76, %c0_77] : memref<16x32xf32, #tpu.memory_space<vmem>>, vector<2x32xf32>
    tpu.vector_store %arg7[%c12_76, %c0_77], %338 {strides = array<i32>} : memref<16x32xf32, #tpu.memory_space<vmem>>, vector<2x32xf32>,
    %340 = vector.extract_strided_slice %190 {offsets = [14, 0], sizes = [2, 128], strides = [1, 1]} : vector<16x128xf32> to vector<2x128xf32>
    %341 = arith.truncf %338 : vector<2x32xf32> to vector<2x32xbf16>
    %cst_78 = arith.constant dense<0.000000e+00> : vector<2x128xf32>
    %342 = tpu.matmul %341, %183, %cst_78 {dimension_numbers = #tpu.dot_dimension_numbers<[1], [0], [0], [1], [0, 0, 1, 1], [], []>} : vector<2x32xbf16>, vector<32x128xbf16>, vector<2x128xf32> -> vector<2x128xf32>
    %343 = arith.addf %340, %342 : vector<2x128xf32>
    %344 = vector.extract_strided_slice %343 {offsets = [0, 0], sizes = [2, 96], strides = [1, 1]} : vector<2x128xf32> to vector<2x96xf32>
    %345 = arith.negf %344 : vector<2x96xf32>
    %346 = math.exp %345 : vector<2x96xf32>
    %cst_79 = arith.constant 1.000000e+00 : f32
    %347 = vector.broadcast %cst_79 : f32 to vector<2x96xf32>
    %348 = arith.addf %347, %346 : vector<2x96xf32>
    %349 = arith.divf %347, %348 : vector<2x96xf32>
    %350 = vector.extract_strided_slice %343 {offsets = [0, 96], sizes = [2, 32], strides = [1, 1]} : vector<2x128xf32> to vector<2x32xf32>
    %351 = math.tanh %350 : vector<2x32xf32>
    %352 = vector.extract_strided_slice %349 {offsets = [0, 0], sizes = [2, 32], strides = [1, 1]} : vector<2x96xf32> to vector<2x32xf32>
    %353 = vector.extract_strided_slice %349 {offsets = [0, 32], sizes = [2, 32], strides = [1, 1]} : vector<2x96xf32> to vector<2x32xf32>
    %354 = vector.extract_strided_slice %349 {offsets = [0, 64], sizes = [2, 32], strides = [1, 1]} : vector<2x96xf32> to vector<2x32xf32>
    %355 = arith.mulf %352, %336 : vector<2x32xf32>
    %356 = arith.mulf %353, %351 : vector<2x32xf32>
    %357 = arith.addf %355, %356 : vector<2x32xf32>
    %358 = math.tanh %357 : vector<2x32xf32>
    %359 = arith.mulf %354, %358 : vector<2x32xf32>
    %c14_80 = arith.constant 14 : index
    %c0_81 = arith.constant 0 : index
    %360 = vector.load %arg7[%c14_80, %c0_81] : memref<16x32xf32, #tpu.memory_space<vmem>>, vector<2x32xf32>
    tpu.vector_store %arg7[%c14_80, %c0_81], %359 {strides = array<i32>} : memref<16x32xf32, #tpu.memory_space<vmem>>, vector<2x32xf32>,
    %c0_82 = arith.constant 0 : index
    %c0_83 = arith.constant 0 : index
    %361 = vector.load %arg7[%c0_82, %c0_83] : memref<16x32xf32, #tpu.memory_space<vmem>>, vector<16x32xf32>
    %362 = arith.truncf %361 : vector<16x32xf32> to vector<16x32xbf16>
    %c0_84 = arith.constant 0 : index
    %c0_85 = arith.constant 0 : index
    %363 = vector.load %arg4[%c0_84, %c0_85] : memref<32x128xbf16, #tpu.memory_space<vmem>>, vector<32x128xbf16>
    %cst_86 = arith.constant dense<0.000000e+00> : vector<16x128xf32>
    %364 = tpu.matmul %362, %363, %cst_86 {dimension_numbers = #tpu.dot_dimension_numbers<[1], [0], [0], [1], [0, 0, 1, 1], [], []>} : vector<16x32xbf16>, vector<32x128xbf16>, vector<16x128xf32> -> vector<16x128xf32>
    %c0_87 = arith.constant 0 : index
    %c0_88 = arith.constant 0 : index
    %365 = vector.load %arg5[%c0_87, %c0_88] : memref<1x128xf32, #tpu.memory_space<vmem>>, vector<1x128xf32>
    %366 = vector.broadcast %365 : vector<1x128xf32> to vector<16x128xf32>
    %367 = arith.addf %364, %366 : vector<16x128xf32>
    %c0_89 = arith.constant 0 : index
    %c0_90 = arith.constant 0 : index
    %368 = vector.load %arg6[%c0_89, %c0_90] : memref<16x128xf32, #tpu.memory_space<vmem>>, vector<16x128xf32>
    tpu.vector_store %arg6[%c0_89, %c0_90], %367 {strides = array<i32>} : memref<16x128xf32, #tpu.memory_space<vmem>>, vector<16x128xf32>,
    return
  }
}

</mosaic_0001>

<bundles_post_ra>
// kernel: tpu_custom_call.1
= control target key start
LH: loop header
LB: loop body
LE: loop exit
PB: predicated region body
PF: predicated region fallthrough
CT: control target
= control target key end

     0   :  { %11 = vsyncpa [#allocation4], 0  ;;  %s2647_s0 = inlined_call_operand.hbm [shape: bf16[16,32], index: 0, kind: input, shape index: {}]   ;;  %s2648_s1 = inlined_call_operand.hbm [shape: bf16[2,32,128], index: 1, kind: input, shape index: {}]   ;;  %s2649_s2 = inlined_call_operand.hbm [shape: bf16[2,32,128], index: 2, kind: input, shape index: {}]   ;;  %s2650_s3 = inlined_call_operand.vmem [shape: f32[2,1,128], index: 3, kind: input, shape index: {}]   ;;  %s2651_s4 = inlined_call_operand.hbm [shape: bf16[32,128], index: 4, kind: input, shape index: {}]   ;;  %s2652_s5 = inlined_call_operand.vmem [shape: f32[1,128], index: 5, kind: input, shape index: {}]   ;;  %s2653_s6 = inlined_call_operand.hbm [shape: f32[16,128], index: 6, kind: output, shape index: {}]  }
   0x1   :  { %12 = vsyncpa [#allocation7], 0 }
   0x2   :  { %13 = vsyncpa [#allocation10], 0 }
   0x3   :  { %14 = vsyncpa [#allocation5], 0  ;;  %s2191_s21 = smov [#allocation6]   ;;  %s2192_s23 = smov [#allocation3]  }
   0x4   :  { %s32_s22 = sshll.u32 %s2191_s21, 4  ;;  %s20_s24 = sshll.u32 %s2192_s23, 4  ;;  %s33_s22 = int_to_ptr.vmem [resolvable:$true] %s32_s22  ;;  %s2239_s24 = int_to_ptr.vmem [resolvable:$true] %s20_s24 }
   0x5   :  { %s2073_s27 = scalar_lea.hbm %s2648_s1, 512 }
   0x6   :  { %p2074_p0 = scmp.ne.s32.totalorder %s2648_s1, %s2073_s27  ;;  %p2077_p1 = scmp.lt.u32.totalorder %s2073_s27, %s2648_s1 }
   0x8   :  { %p2079_p2 = pnand %p2077_p1, %p2074_p0 }
   0xa   :  { %2082 = shalt.err (!%p2079_p2)
}
   0xb   :  { %s2083_s8 = scalar_lea.vmem %s33_s22, 512  ;;  %p2088_p4 = scmp.lt.s32.totalorder %s33_s22, %s33_s22 }
   0xc   :  { %p2084_p3 = scmp.ne.s32.totalorder %s33_s22, %s2083_s8  ;;  %p2089_p5 = scmp.lt.s32.totalorder %s2083_s8, %s2083_s8 }
   0xe   :  { %p2090_p6 = por %p2089_p5, %p2088_p4 }
  0x10   :  { %p2091_p7 = pnand %p2090_p6, %p2084_p3 }
  0x12   :  { %2094 = shalt.err (!%p2091_p7)
}
  0x13   :  { %s2193_s9 = smov 64   ;;  %s2194_s10 = smov 4  }
  0x14   :  { %38 = dma.hbm_to_vmem [thread:$0]  %s2648_s1, 512, %s33_s22, [#allocation7], %s2193_s9, %s2193_s9, %s2194_s10  }
  0x15   :  { %s2095_s15 = scalar_lea.hbm %s2647_s0, 128 }
  0x16   :  { %p2096_p8 = scmp.ne.s32.totalorder %s2647_s0, %s2095_s15  ;;  %p2099_p9 = scmp.lt.u32.totalorder %s2095_s15, %s2647_s0 }
  0x18   :  { %p2101_p10 = pnand %p2099_p9, %p2096_p8 }
  0x1a   :  { %2104 = shalt.err (!%p2101_p10)
}
  0x1b   :  { %s2105_s20 = scalar_lea.vmem %s2239_s24, 128  ;;  %p2110_p12 = scmp.lt.s32.totalorder %s2239_s24, %s2239_s24 }
  0x1c   :  { %p2106_p11 = scmp.ne.s32.totalorder %s2239_s24, %s2105_s20  ;;  %p2111_p13 = scmp.lt.s32.totalorder %s2105_s20, %s2105_s20 }
  0x1e   :  { %p2112_p0 = por %p2111_p13, %p2110_p12 }
  0x20   :  { %p2113_p1 = pnand %p2112_p0, %p2106_p11 }
  0x22   :  { %2116 = shalt.err (!%p2113_p1)
}
  0x23   :  { %26 = dma.hbm_to_vmem [thread:$0]  %s2647_s0, 128, %s2239_s24, [#allocation4], %s2193_s9, %s2193_s9, %s2194_s10  }
  0x24   :  { %s2195_s22 = smov [#allocation8]   ;;  %s2196_s25 = smov [#allocation9]  }
  0x25   :  { %s44_s23 = sshll.u32 %s2195_s22, 4  ;;  %s58_s26 = sshll.u32 %s2196_s25, 4  ;;  %s45_s23 = int_to_ptr.vmem [resolvable:$true] %s44_s23  ;;  %s2276_s26 = int_to_ptr.vmem [resolvable:$true] %s58_s26 }
  0x26   :  { %s2117_s29 = scalar_lea.hbm %s2649_s2, 512 }
  0x27   :  { %p2118_p2 = scmp.ne.s32.totalorder %s2649_s2, %s2117_s29  ;;  %p2121_p3 = scmp.lt.u32.totalorder %s2117_s29, %s2649_s2 }
  0x29   :  { %p2123_p4 = pnand %p2121_p3, %p2118_p2 }
  0x2b   :  { %2126 = shalt.err (!%p2123_p4)
}
  0x2c   :  { %s2127_s0 = scalar_lea.vmem %s45_s23, 512  ;;  %p2132_p6 = scmp.lt.s32.totalorder %s45_s23, %s45_s23 }
  0x2d   :  { %p2128_p5 = scmp.ne.s32.totalorder %s45_s23, %s2127_s0  ;;  %p2133_p7 = scmp.lt.s32.totalorder %s2127_s0, %s2127_s0 }
  0x2f   :  { %p2134_p8 = por %p2133_p7, %p2132_p6 }
  0x31   :  { %p2135_p9 = pnand %p2134_p8, %p2128_p5 }
  0x33   :  { %2138 = shalt.err (!%p2135_p9)
}
  0x34   :  { %50 = dma.hbm_to_vmem [thread:$0]  %s2649_s2, 512, %s45_s23, [#allocation7], %s2193_s9, %s2193_s9, %s2194_s10  }
  0x35   :  { %s2139_s15 = scalar_lea.hbm %s2651_s4, 256 }
  0x36   :  { %p2140_p10 = scmp.ne.s32.totalorder %s2651_s4, %s2139_s15  ;;  %p2143_p11 = scmp.lt.u32.totalorder %s2139_s15, %s2651_s4 }
  0x38   :  { %p2145_p12 = pnand %p2143_p11, %p2140_p10 }
  0x3a   :  { %2148 = shalt.err (!%p2145_p12)
}
  0x3b   :  { %s2149_s20 = scalar_lea.vmem %s2276_s26, 256  ;;  %p2154_p0 = scmp.lt.s32.totalorder %s2276_s26, %s2276_s26 }
  0x3c   :  { %p2150_p13 = scmp.ne.s32.totalorder %s2276_s26, %s2149_s20  ;;  %p2155_p1 = scmp.lt.s32.totalorder %s2149_s20, %s2149_s20 }
  0x3e   :  { %p2156_p2 = por %p2155_p1, %p2154_p0 }
  0x40   :  { %p2157_p3 = pnand %p2156_p2, %p2150_p13 }
  0x42   :  { %2160 = shalt.err (!%p2157_p3)
}
  0x43   :  { %64 = dma.hbm_to_vmem [thread:$0]  %s2651_s4, 256, %s2276_s26, [#allocation10], %s2193_s9, %s2193_s9, %s2194_s10  }
  0x44   :  { %2183 = dma.done.wait [#allocation4], 128  }
  0x45   :  { %2184 = vsyncadd [#allocation4], 4294967168 }
  0x46   :  { %2185 = dma.done.wait [#allocation7], 1024  }
  0x47   :  { %2186 = vsyncadd [#allocation7], 4294966272 }
  0x48   :  { %2187 = dma.done.wait [#allocation10], 256  }
  0x49   :  { %2188 = vsyncadd [#allocation10], 4294967040  ;;  %v2197_v0 = vmov 0.0   ;;  %vm2198_vm0 = vmmov 0   ;;  %v1934_v1 = vld [vmem:[#allocation6] sm:$0xff]   ;;  %v1936_v3 = vld [vmem:[#allocation6 + $0x8] sm:$0xff]  }
  0x4a   :  { %1769 = vmatprep.subr.bf16.mxu0 %v2197_v0  ;;  %1777 = vmatprep.subr.bf16.mxu1 %v2197_v0  ;;  %v2319_v2 = vld [vmem:[#allocation8] sm:$0xff]   ;;  %v2323_v4 = vld [vmem:[#allocation8 + $0x8] sm:$0xff]   ;;  %vm114_vm1 = vcmask 261120   ;;  %v1938_v5 = vld [vmem:[#allocation3] sm:$0xff]   ;;  %v2199_v6 = vmov 0   ;;  %s2200_s21 = smov 96  }
  0x4b   :  { %1773 = vmatprep.mubr.msk.bf16.mxu0 %vm2198_vm0, %v2197_v0  ;;  %1781 = vmatprep.mubr.msk.bf16.mxu1 %vm2198_vm0, %v2197_v0  ;;  %v1664_v7 = vld [vmem:[%s2650_s3] ss:$0 sm:$0xff]  ;;  %vm243_vm2 = vcmask 254976   ;;  %vm412_vm3 = vcmask 259076   ;;  %vm327_vm4 = vcmask 257026   ;;  %vm497_vm5 = vcmask 261126  }
  0x4c   :  { %1770 = vmatpush3.bf16.msra.mxu0 %v1934_v1  ;;  %1778 = vmatpush3.bf16.msra.mxu1 %v2319_v2 }
  0x4d   :  { %1771 = vmatprep.subr.bf16.mxu0 %v2197_v0  ;;  %1779 = vmatprep.subr.bf16.mxu1 %v2197_v0 }
  0x50   :  { %1772 = vmatpush3.bf16.msra.mxu0 %v1936_v3  ;;  %1780 = vmatpush3.bf16.msra.mxu1 %v2323_v4 }
  0x51   :  { %1785 = vmatprep.subr.bf16.mxu0 %v2197_v0  ;;  %1793 = vmatprep.subr.bf16.mxu1 %v2197_v0 }
  0x53   :  { %1774 = vmatmul.mubr.msk.bf16.vlgmr.msra.gmra.mrb[0].mxu0 %vm114_vm1, %v1938_v5  ;;  %1782 = vmatmul.mubr.bf16.vlgmr.msra.gmra.mrb[0].mxu1 %v2199_v6 }
  0x54   :  { %1786 = vmatpush3.bf16.msra.mxu0 %v2319_v2  ;;  %1789 = vmatprep.mubr.msk.bf16.mxu0 %vm2198_vm0, %v2197_v0 }
  0x55   :  { %1787 = vmatprep.subr.bf16.mxu0 %v2197_v0  ;;  %1794 = vmatpush3.bf16.msra.mxu1 %v2319_v2 }
  0x56   :  { %1797 = vmatprep.mubr.msk.bf16.mxu1 %vm2198_vm0, %v2197_v0  ;;  %1795 = vmatprep.subr.bf16.mxu1 %v2197_v0 }
  0x58   :  { %1788 = vmatpush3.bf16.msra.mxu0 %v2323_v4 }
  0x59   :  { %1801 = vmatprep.subr.bf16.mxu0 %v2197_v0  ;;  %1796 = vmatpush3.bf16.msra.mxu1 %v2323_v4 }
  0x5a   :  { %1809 = vmatprep.subr.bf16.mxu1 %v2197_v0 }
 0x126   :  { %v152_v8 = vpop.f32.mrb[0].mxu0  ;;  %v208_v10 = vpop.f32.mrb[0].mxu1 }
 0x127   :  { %v2346_v9 = vadd.f32 %v1664_v7, %v152_v8  ;;  %v1775_v11 = vpop.f32.mrb[1].mxu0  ;;  %v1783_v12 = vpop.f32.mrb[1].mxu1 }
 0x128   :  { %v155_v13 = vpop.f32.mrb[2].mxu0  ;;  %v211_v16 = vpop.f32.mrb[2].mxu1 }
 0x129   :  { %v214_v14 = vadd.f32 %v208_v10, %v2346_v9  ;;  %v2349_v15 = vadd.f32 %v1664_v7, %v155_v13  ;;  %v1776_v17 = vpop.f32.mrb[3].mxu0  ;;  %v1784_v18 = vpop.f32.mrb[3].mxu1 }
 0x12b   :  { %1945 = vtanh.f32 %v214_v14  ;;  %v1671_v20 = vmul.f32 -1.442695, %v214_v14 }
 0x12d   :  { %1947 = vpow2.f32 %v1671_v20 }
 0x135   :  { %v1946_v19 = vpop.eup %1945 }
 0x136   :  { %224 = vrot.lane.b32.xlu0 %v1946_v19, %s2193_s9 }
 0x137   :  { %v1948_v21 = vpop.eup %1947 }
 0x138   :  { %v218_v22 = vadd.f32 1.0, %v1948_v21 }
 0x13a   :  { %1949 = vrcp.f32 %v218_v22 }
 0x144   :  { %v1950_v23 = vpop.eup %1949 }
 0x145   :  { %v222_v26 = vmul.f32 0.0, %v1950_v23 }
 0x1a8   :  { %v225_v24 = vpop.permute.xlu0 %224 }
 0x1a9   :  { %v227_v25 = vmul.f32 %v1950_v23, %v225_v24 }
 0x1ab   :  { %229 = vrot.lane.b32.xlu0 %v227_v25, %s2200_s21 }
 0x21d   :  { %v230_v27 = vpop.permute.xlu0 %229 }
 0x21e   :  { %v232_v28 = vadd.f32 %v230_v27, %v222_v26 }
 0x220   :  { %1951 = vtanh.f32 %v232_v28  ;;  %v304_v47 = vrot.slane %v232_v28, 6 }
 0x22a   :  { %v1952_v29 = vpop.eup %1951 }
 0x22b   :  { %235 = vrot.lane.b32.xlu1 %v1952_v29, %s2193_s9 }
 0x29d   :  { %v236_v30 = vpop.permute.xlu1 %235 }
 0x29e   :  { %v2354_v31 = vmul.f32 %v1950_v23, %v236_v30 }
 0x2a0   :  { %v245_v32 = vpack.c.bf16 %v2354_v31, %v2354_v31 }
 0x2a2   :  { %247 = vrot.lane.b32.xlu1 %v245_v32, %s2193_s9 }
 0x314   :  { %v248_v33 = vpop.permute.xlu1 %247 }
 0x315   :  { %1790 = vmatmul.mubr.msk.bf16.vlgmr.msra.gmra.mrb[4].mxu0 %vm114_vm1, %v248_v33 }
 0x316   :  { %1802 = vmatpush3.bf16.msra.mxu0 %v2319_v2  ;;  %1805 = vmatprep.mubr.msk.bf16.mxu0 %vm2198_vm0, %v2197_v0 }
 0x317   :  { %1803 = vmatprep.subr.bf16.mxu0 %v2197_v0 }
 0x31a   :  { %1804 = vmatpush3.bf16.msra.mxu0 %v2323_v4 }
 0x31b   :  { %1817 = vmatprep.subr.bf16.mxu0 %v2197_v0 }
 0x3e8   :  { %v286_v34 = vpop.f32.mrb[4].mxu0 }
 0x3e9   :  { %v293_v35 = vrot.slane %v286_v34, 6  ;;  %v1791_v36 = vpop.f32.mrb[5].mxu0 }
 0x3ea   :  { %v289_v37 = vpop.f32.mrb[6].mxu0 }
 0x3eb   :  { %v295_v38 = vadd.f32 %v293_v35, %v2346_v9  ;;  %v1792_v39 = vpop.f32.mrb[7].mxu0 }
 0x3ed   :  { %1953 = vtanh.f32 %v295_v38  ;;  %v1673_v41 = vmul.f32 -1.442695, %v295_v38 }
 0x3ef   :  { %1955 = vpow2.f32 %v1673_v41 }
 0x3f7   :  { %v1954_v40 = vpop.eup %1953 }
 0x3f8   :  { %308 = vrot.lane.b32.xlu0 %v1954_v40, %s2193_s9 }
 0x3f9   :  { %v1956_v42 = vpop.eup %1955 }
 0x3fa   :  { %v299_v43 = vadd.f32 1.0, %v1956_v42 }
 0x3fc   :  { %1957 = vrcp.f32 %v299_v43 }
 0x406   :  { %v1958_v44 = vpop.eup %1957 }
 0x407   :  { %v306_v48 = vmul.f32 %v1958_v44, %v304_v47 }
 0x46a   :  { %v309_v45 = vpop.permute.xlu0 %308 }
 0x46b   :  { %v311_v46 = vmul.f32 %v1958_v44, %v309_v45 }
 0x46d   :  { %313 = vrot.lane.b32.xlu1 %v311_v46, %s2200_s21 }
 0x4df   :  { %v314_v49 = vpop.permute.xlu1 %313 }
 0x4e0   :  { %v316_v50 = vadd.f32 %v314_v49, %v306_v48 }
 0x4e2   :  { %1959 = vtanh.f32 %v316_v50  ;;  %v389_v11 = vrot.slane %v316_v50, 6 }
 0x4ec   :  { %v1960_v51 = vpop.eup %1959 }
 0x4ed   :  { %319 = vrot.lane.b32.xlu0 %v1960_v51, %s2193_s9 }
 0x55f   :  { %v320_v52 = vpop.permute.xlu0 %319 }
 0x560   :  { %v2370_v53 = vmul.f32 %v1958_v44, %v320_v52 }
 0x562   :  { %v329_v54 = vpack.c.bf16 %v2370_v53, %v2370_v53 }
 0x564   :  { %v331_v55 = vrot.slane %v329_v54, 1 }
 0x566   :  { %332 = vrot.lane.b32.xlu1 %v331_v55, %s2193_s9 }
 0x5d8   :  { %v333_v56 = vpop.permute.xlu1 %332 }
 0x5d9   :  { %1798 = vmatmul.mubr.msk.bf16.vlgmr.msra.gmra.mrb[4].mxu1 %vm114_vm1, %v333_v56 }
 0x5da   :  { %1810 = vmatpush3.bf16.msra.mxu1 %v2319_v2  ;;  %1813 = vmatprep.mubr.msk.bf16.mxu1 %vm2198_vm0, %v2197_v0 }
 0x5db   :  { %1811 = vmatprep.subr.bf16.mxu1 %v2197_v0 }
 0x5de   :  { %1812 = vmatpush3.bf16.msra.mxu1 %v2323_v4 }
 0x5df   :  { %1825 = vmatprep.subr.bf16.mxu1 %v2197_v0 }
 0x6ac   :  { %v371_v57 = vpop.f32.mrb[4].mxu1 }
 0x6ad   :  { %v378_v58 = vrot.slane %v371_v57, 4  ;;  %v1799_v59 = vpop.f32.mrb[5].mxu1 }
 0x6ae   :  { %v374_v60 = vpop.f32.mrb[6].mxu1 }
 0x6af   :  { %v380_v61 = vadd.f32 %v378_v58, %v2346_v9  ;;  %v1800_v62 = vpop.f32.mrb[7].mxu1 }
 0x6b1   :  { %1961 = vtanh.f32 %v380_v61  ;;  %v1675_v1 = vmul.f32 -1.442695, %v380_v61 }
 0x6b3   :  { %1963 = vpow2.f32 %v1675_v1 }
 0x6bb   :  { %v1962_v63 = vpop.eup %1961 }
 0x6bc   :  { %393 = vrot.lane.b32.xlu0 %v1962_v63, %s2193_s9 }
 0x6bd   :  { %v1964_v3 = vpop.eup %1963 }
 0x6be   :  { %v384_v5 = vadd.f32 1.0, %v1964_v3 }
 0x6c0   :  { %1965 = vrcp.f32 %v384_v5 }
 0x6ca   :  { %v1966_v7 = vpop.eup %1965 }
 0x6cb   :  { %v391_v12 = vmul.f32 %v1966_v7, %v389_v11 }
 0x72e   :  { %v394_v8 = vpop.permute.xlu0 %393 }
 0x72f   :  { %v396_v10 = vmul.f32 %v1966_v7, %v394_v8 }
 0x731   :  { %398 = vrot.lane.b32.xlu1 %v396_v10, %s2200_s21 }
 0x7a3   :  { %v399_v13 = vpop.permute.xlu1 %398 }
 0x7a4   :  { %v401_v14 = vadd.f32 %v399_v13, %v391_v12 }
 0x7a6   :  { %1967 = vtanh.f32 %v401_v14  ;;  %v474_v36 = vrot.slane %v401_v14, 6 }
 0x7b0   :  { %v1968_v16 = vpop.eup %1967 }
 0x7b1   :  { %404 = vrot.lane.b32.xlu0 %v1968_v16, %s2193_s9 }
 0x823   :  { %v405_v17 = vpop.permute.xlu0 %404 }
 0x824   :  { %v2386_v18 = vmul.f32 %v1966_v7, %v405_v17 }
 0x826   :  { %v414_v19 = vpack.c.bf16 %v2386_v18, %v2386_v18 }
 0x828   :  { %v416_v20 = vrot.slane %v414_v19, 2 }
 0x82a   :  { %417 = vrot.lane.b32.xlu1 %v416_v20, %s2193_s9 }
 0x89c   :  { %v418_v21 = vpop.permute.xlu1 %417 }
 0x89d   :  { %1806 = vmatmul.mubr.msk.bf16.vlgmr.msra.gmra.mrb[8].mxu0 %vm114_vm1, %v418_v21 }
 0x89e   :  { %1818 = vmatpush3.bf16.msra.mxu0 %v2319_v2  ;;  %1821 = vmatprep.mubr.msk.bf16.mxu0 %vm2198_vm0, %v2197_v0 }
 0x89f   :  { %1819 = vmatprep.subr.bf16.mxu0 %v2197_v0 }
 0x8a2   :  { %1820 = vmatpush3.bf16.msra.mxu0 %v2323_v4 }
 0x8a3   :  { %1833 = vmatprep.subr.bf16.mxu0 %v2197_v0 }
 0x970   :  { %v456_v22 = vpop.f32.mrb[8].mxu0 }
 0x971   :  { %v463_v23 = vrot.slane %v456_v22, 2  ;;  %v1807_v24 = vpop.f32.mrb[9].mxu0 }
 0x972   :  { %v459_v25 = vpop.f32.mrb[10].mxu0 }
 0x973   :  { %v465_v26 = vadd.f32 %v463_v23, %v2346_v9  ;;  %v1808_v27 = vpop.f32.mrb[11].mxu0 }
 0x975   :  { %1969 = vtanh.f32 %v465_v26  ;;  %v1677_v29 = vmul.f32 -1.442695, %v465_v26 }
 0x977   :  { %1971 = vpow2.f32 %v1677_v29 }
 0x97f   :  { %v1970_v28 = vpop.eup %1969 }
 0x980   :  { %478 = vrot.lane.b32.xlu0 %v1970_v28, %s2193_s9 }
 0x981   :  { %v1972_v30 = vpop.eup %1971 }
 0x982   :  { %v469_v32 = vadd.f32 1.0, %v1972_v30 }
 0x984   :  { %1973 = vrcp.f32 %v469_v32 }
 0x98e   :  { %v1974_v33 = vpop.eup %1973 }
 0x98f   :  { %v476_v37 = vmul.f32 %v1974_v33, %v474_v36 }
 0x9f2   :  { %v479_v34 = vpop.permute.xlu0 %478 }
 0x9f3   :  { %v481_v35 = vmul.f32 %v1974_v33, %v479_v34 }
 0x9f5   :  { %483 = vrot.lane.b32.xlu1 %v481_v35, %s2200_s21 }
 0xa67   :  { %v484_v38 = vpop.permute.xlu1 %483 }
 0xa68   :  { %v486_v39 = vadd.f32 %v484_v38, %v476_v37 }
 0xa6a   :  { %1975 = vtanh.f32 %v486_v39  ;;  %v556_v58 = vrot.slane %v486_v39, 6 }
 0xa74   :  { %v1976_v9 = vpop.eup %1975 }
 0xa75   :  { %489 = vrot.lane.b32.xlu0 %v1976_v9, %s2193_s9 }
 0xae7   :  { %v490_v40 = vpop.permute.xlu0 %489 }
 0xae8   :  { %v2402_v41 = vmul.f32 %v1974_v33, %v490_v40 }
 0xaea   :  { %v499_v42 = vpack.c.bf16 %v2402_v41, %v2402_v41 }
 0xaec   :  { %v501_v43 = vrot.slane %v499_v42, 3 }
 0xaee   :  { %502 = vrot.lane.b32.xlu1 %v501_v43, %s2193_s9 }
 0xb60   :  { %v503_v44 = vpop.permute.xlu1 %502 }
 0xb61   :  { %1814 = vmatmul.mubr.msk.bf16.vlgmr.msra.gmra.mrb[8].mxu1 %vm114_vm1, %v503_v44 }
 0xb62   :  { %1826 = vmatpush3.bf16.msra.mxu1 %v2319_v2  ;;  %1829 = vmatprep.mubr.msk.bf16.mxu1 %vm2198_vm0, %v2197_v0 }
 0xb63   :  { %1827 = vmatprep.subr.bf16.mxu1 %v2197_v0 }
 0xb66   :  { %1828 = vmatpush3.bf16.msra.mxu1 %v2323_v4 }
 0xb67   :  { %1841 = vmatprep.subr.bf16.mxu1 %v2197_v0 }
 0xc34   :  { %v541_v45 = vpop.f32.mrb[8].mxu1 }
 0xc35   :  { %v547_v46 = vadd.f32 %v541_v45, %v2349_v15  ;;  %v1815_v47 = vpop.f32.mrb[9].mxu1 }
 0xc36   :  { %v544_v48 = vpop.f32.mrb[10].mxu1 }
 0xc37   :  { %1977 = vtanh.f32 %v547_v46  ;;  %v1816_v49 = vpop.f32.mrb[11].mxu1  ;;  %v1679_v51 = vmul.f32 -1.442695, %v547_v46 }
 0xc39   :  { %1979 = vpow2.f32 %v1679_v51 }
 0xc41   :  { %v1978_v50 = vpop.eup %1977 }
 0xc42   :  { %560 = vrot.lane.b32.xlu0 %v1978_v50, %s2193_s9 }
 0xc43   :  { %v1980_v52 = vpop.eup %1979 }
 0xc44   :  { %v551_v54 = vadd.f32 1.0, %v1980_v52 }
 0xc46   :  { %1981 = vrcp.f32 %v551_v54 }
 0xc50   :  { %v1982_v55 = vpop.eup %1981 }
 0xc51   :  { %v558_v59 = vmul.f32 %v1982_v55, %v556_v58 }
 0xcb4   :  { %v561_v56 = vpop.permute.xlu0 %560 }
 0xcb5   :  { %v563_v57 = vmul.f32 %v1982_v55, %v561_v56 }
 0xcb7   :  { %565 = vrot.lane.b32.xlu1 %v563_v57, %s2200_s21 }
 0xd29   :  { %v566_v60 = vpop.permute.xlu1 %565 }
 0xd2a   :  { %v568_v61 = vadd.f32 %v566_v60, %v558_v59 }
 0xd2c   :  { %1983 = vtanh.f32 %v568_v61  ;;  %v639_v21 = vrot.slane %v568_v61, 6 }
 0xd36   :  { %v1984_v62 = vpop.eup %1983 }
 0xd37   :  { %571 = vrot.lane.b32.xlu0 %v1984_v62, %s2193_s9 }
 0xda9   :  { %v572_v63 = vpop.permute.xlu0 %571 }
 0xdaa   :  { %v2418_v1 = vmul.f32 %v1982_v55, %v572_v63 }
 0xdac   :  { %v580_v3 = vpack.c.bf16 %v2418_v1, %v2418_v1 }
 0xdae   :  { %582 = vrot.lane.b32.xlu1 %v580_v3, %s2193_s9 }
 0xe20   :  { %v583_v5 = vpop.permute.xlu1 %582 }
 0xe21   :  { %1822 = vmatmul.mubr.msk.bf16.vlgmr.msra.gmra.mrb[12].mxu0 %vm114_vm1, %v583_v5 }
 0xe22   :  { %1834 = vmatpush3.bf16.msra.mxu0 %v2319_v2  ;;  %1837 = vmatprep.mubr.msk.bf16.mxu0 %vm2198_vm0, %v2197_v0 }
 0xe23   :  { %1835 = vmatprep.subr.bf16.mxu0 %v2197_v0 }
 0xe26   :  { %1836 = vmatpush3.bf16.msra.mxu0 %v2323_v4 }
 0xe27   :  { %1849 = vmatprep.subr.bf16.mxu0 %v2197_v0 }
 0xef4   :  { %v621_v7 = vpop.f32.mrb[12].mxu0 }
 0xef5   :  { %v628_v8 = vrot.slane %v621_v7, 6  ;;  %v1823_v10 = vpop.f32.mrb[13].mxu0 }
 0xef6   :  { %v624_v11 = vpop.f32.mrb[14].mxu0 }
 0xef7   :  { %v630_v12 = vadd.f32 %v628_v8, %v2349_v15  ;;  %v1824_v13 = vpop.f32.mrb[15].mxu0 }
 0xef9   :  { %1985 = vtanh.f32 %v630_v12  ;;  %v1681_v2 = vmul.f32 -1.442695, %v630_v12 }
 0xefb   :  { %1987 = vpow2.f32 %v1681_v2 }
 0xf03   :  { %v1986_v14 = vpop.eup %1985 }
 0xf04   :  { %643 = vrot.lane.b32.xlu0 %v1986_v14, %s2193_s9 }
 0xf05   :  { %v1988_v16 = vpop.eup %1987 }
 0xf06   :  { %v634_v17 = vadd.f32 1.0, %v1988_v16  ;;  %v1939_v16 = vld [vmem:[#allocation6 + $0x10] sm:$0xff]  }
 0xf08   :  { %1989 = vrcp.f32 %v634_v17  ;;  %v2471_v17 = vld [vmem:[#allocation8 + $0x10] sm:$0xff]  }
 0xf12   :  { %v1990_v19 = vpop.eup %1989 }
 0xf13   :  { %v641_v22 = vmul.f32 %v1990_v19, %v639_v21 }
 0xf76   :  { %v644_v4 = vpop.permute.xlu0 %643 }
 0xf77   :  { %v646_v20 = vmul.f32 %v1990_v19, %v644_v4  ;;  %v2474_v4 = vld [vmem:[#allocation8 + $0x18] sm:$0xff]  }
 0xf79   :  { %648 = vrot.lane.b32.xlu1 %v646_v20, %s2200_s21 }
 0xfeb   :  { %v649_v23 = vpop.permute.xlu1 %648 }
 0xfec   :  { %v651_v24 = vadd.f32 %v649_v23, %v641_v22 }
 0xfee   :  { %1991 = vtanh.f32 %v651_v24  ;;  %v723_v45 = vrot.slane %v651_v24, 6 }
 0xff8   :  { %v1992_v25 = vpop.eup %1991 }
 0xff9   :  { %654 = vrot.lane.b32.xlu0 %v1992_v25, %s2193_s9 }
0x106b   :  { %v655_v26 = vpop.permute.xlu0 %654 }
0x106c   :  { %v2434_v27 = vmul.f32 %v1990_v19, %v655_v26  ;;  %v1941_v19 = vld [vmem:[#allocation6 + $0x18] sm:$0xff]  }
0x106e   :  { %v663_v28 = vpack.c.bf16 %v2434_v27, %v2434_v27 }
0x1070   :  { %v665_v29 = vrot.slane %v663_v28, 1 }
0x1072   :  { %666 = vrot.lane.b32.xlu1 %v665_v29, %s2193_s9 }
0x10e4   :  { %v667_v30 = vpop.permute.xlu1 %666 }
0x10e5   :  { %1830 = vmatmul.mubr.msk.bf16.vlgmr.msra.gmra.mrb[12].mxu1 %vm114_vm1, %v667_v30  ;;  %v1687_v30 = vld [vmem:[%s2650_s3 + $0x1] ss:$0 sm:$0xff] }
0x10e6   :  { %1845 = vmatprep.mubr.msk.bf16.mxu1 %vm2198_vm0, %v2197_v0  ;;  %1842 = vmatpush3.bf16.msra.mxu1 %v1939_v16 }
0x10e7   :  { %1843 = vmatprep.subr.bf16.mxu1 %v2197_v0 }
0x10ea   :  { %1844 = vmatpush3.bf16.msra.mxu1 %v1941_v19 }
0x10eb   :  { %1857 = vmatprep.subr.bf16.mxu1 %v2197_v0 }
0x11b8   :  { %v705_v32 = vpop.f32.mrb[12].mxu1 }
0x11b9   :  { %v712_v33 = vrot.slane %v705_v32, 4  ;;  %v1831_v34 = vpop.f32.mrb[13].mxu1 }
0x11ba   :  { %v708_v35 = vpop.f32.mrb[14].mxu1 }
0x11bb   :  { %v714_v36 = vadd.f32 %v712_v33, %v2349_v15  ;;  %v1832_v37 = vpop.f32.mrb[15].mxu1 }
0x11bd   :  { %1993 = vtanh.f32 %v714_v36  ;;  %v1683_v39 = vmul.f32 -1.442695, %v714_v36 }
0x11bf   :  { %1995 = vpow2.f32 %v1683_v39 }
0x11c7   :  { %v1994_v38 = vpop.eup %1993 }
0x11c8   :  { %727 = vrot.lane.b32.xlu0 %v1994_v38, %s2193_s9 }
0x11c9   :  { %v1996_v9 = vpop.eup %1995 }
0x11ca   :  { %v718_v40 = vadd.f32 1.0, %v1996_v9 }
0x11cc   :  { %1997 = vrcp.f32 %v718_v40 }
0x11d6   :  { %v1998_v42 = vpop.eup %1997 }
0x11d7   :  { %v725_v46 = vmul.f32 %v1998_v42, %v723_v45 }
0x123a   :  { %v728_v43 = vpop.permute.xlu0 %727 }
0x123b   :  { %v730_v44 = vmul.f32 %v1998_v42, %v728_v43 }
0x123d   :  { %732 = vrot.lane.b32.xlu1 %v730_v44, %s2200_s21 }
0x12af   :  { %v733_v47 = vpop.permute.xlu1 %732 }
0x12b0   :  { %v735_v48 = vadd.f32 %v733_v47, %v725_v46 }
0x12b2   :  { %1999 = vtanh.f32 %v735_v48 }
0x12bc   :  { %v2000_v49 = vpop.eup %1999 }
0x12bd   :  { %738 = vrot.lane.b32.xlu0 %v2000_v49, %s2193_s9 }
0x132f   :  { %v739_v50 = vpop.permute.xlu0 %738 }
0x1330   :  { %v741_v51 = vmul.f32 %v1998_v42, %v739_v50 }
0x1332   :  { %v747_v52 = vpack.c.bf16 %v741_v51, %v741_v51 }
0x1334   :  { %v749_v54 = vrot.slane %v747_v52, 2 }
0x1336   :  { %750 = vrot.lane.b32.xlu1 %v749_v54, %s2193_s9 }
0x13a8   :  { %v751_v55 = vpop.permute.xlu1 %750 }
0x13a9   :  { %1838 = vmatmul.mubr.msk.bf16.vlgmr.msra.gmra.mrb[16].mxu0 %vm114_vm1, %v751_v55 }
0x13aa   :  { %1853 = vmatprep.mubr.msk.bf16.mxu0 %vm2198_vm0, %v2197_v0  ;;  %1850 = vmatpush3.bf16.msra.mxu0 %v2471_v17 }
0x13ab   :  { %1851 = vmatprep.subr.bf16.mxu0 %v2197_v0 }
0x13ae   :  { %1852 = vmatpush3.bf16.msra.mxu0 %v2474_v4 }
0x13af   :  { %1865 = vmatprep.subr.bf16.mxu0 %v2197_v0 }
0x13b1   :  { %1854 = vmatmul.mubr.bf16.vlgmr.msra.gmra.mrb[20].mxu0 %v2199_v6 }
0x13b2   :  { %1866 = vmatpush3.bf16.msra.mxu0 %v2471_v17  ;;  %1869 = vmatprep.mubr.msk.bf16.mxu0 %vm2198_vm0, %v2197_v0 }
0x13b3   :  { %1867 = vmatprep.subr.bf16.mxu0 %v2197_v0 }
0x13b6   :  { %1868 = vmatpush3.bf16.msra.mxu0 %v2474_v4 }
0x13b7   :  { %1881 = vmatprep.subr.bf16.mxu0 %v2197_v0 }
0x147c   :  { %v789_v56 = vpop.f32.mrb[16].mxu0 }
0x147d   :  { %v796_v57 = vrot.slane %v789_v56, 2  ;;  %v1839_v58 = vpop.f32.mrb[17].mxu0 }
0x147e   :  { %v792_v59 = vpop.f32.mrb[18].mxu0 }
0x147f   :  { %v798_v60 = vadd.f32 %v796_v57, %v2349_v15  ;;  %v1840_v61 = vpop.f32.mrb[19].mxu0  ;;  %v807_v15 = vrot.slane %v735_v48, 6 }
0x1481   :  { %2001 = vtanh.f32 %v798_v60  ;;  %v1685_v63 = vmul.f32 -1.442695, %v798_v60 }
0x1483   :  { %2003 = vpow2.f32 %v1685_v63 }
0x1484   :  { %v954_v26 = vpop.f32.mrb[20].mxu0 }
0x148b   :  { %v2002_v62 = vpop.eup %2001 }
0x148c   :  { %811 = vrot.lane.b32.xlu0 %v2002_v62, %s2193_s9 }
0x148d   :  { %v2004_v3 = vpop.eup %2003 }
0x148e   :  { %v802_v5 = vadd.f32 1.0, %v2004_v3 }
0x1490   :  { %2005 = vrcp.f32 %v802_v5 }
0x149a   :  { %v2006_v7 = vpop.eup %2005 }
0x149b   :  { %v809_v11 = vmul.f32 %v2006_v7, %v807_v15 }
0x14fe   :  { %v812_v8 = vpop.permute.xlu0 %811 }
0x14ff   :  { %v814_v10 = vmul.f32 %v2006_v7, %v812_v8 }
0x1501   :  { %816 = vrot.lane.b32.xlu1 %v814_v10, %s2200_s21 }
0x1505   :  { %240 = vrot.lane.b32.xlu1 %v2354_v31, %s2193_s9 }
0x1509   :  { %409 = vrot.lane.b32.xlu1 %v2386_v18, %s2193_s9 }
0x150d   :  { %576 = vrot.lane.b32.xlu1 %v2418_v1, %s2193_s9 }
0x1511   :  { %743 = vrot.lane.b32.xlu1 %v741_v51, %s2193_s9 }
0x1573   :  { %v817_v12 = vpop.permute.xlu1 %816 }
0x1574   :  { %v819_v13 = vadd.f32 %v817_v12, %v809_v11 }
0x1576   :  { %2007 = vtanh.f32 %v819_v13 }
0x1577   :  { %v241_v14 = vpop.permute.xlu1 %240 }
0x1578   :  { %244 = vst.msk [vmem:[#allocation2] sm:$0x3] %vm243_vm2, %v241_v14 }
0x157b   :  { %v410_v2 = vpop.permute.xlu1 %409 }
0x157c   :  { %413 = vst.msk [vmem:[#allocation2] sm:$0x30] %vm412_vm3, %v410_v2 }
0x157f   :  { %v577_v31 = vpop.permute.xlu1 %576 }
0x1580   :  { %v2008_v18 = vpop.eup %2007  ;;  %579 = vst.msk [vmem:[#allocation2 + $0x8] sm:$0x3] %vm243_vm2, %v577_v31 }
0x1581   :  { %822 = vrot.lane.b32.xlu0 %v2008_v18, %s2193_s9 }
0x1583   :  { %v744_v1 = vpop.permute.xlu1 %743 }
0x1584   :  { %746 = vst.msk [vmem:[#allocation2 + $0x8] sm:$0x30] %vm412_vm3, %v744_v1 }
0x1585   :  { %324 = vrot.lane.b32.xlu0 %v2370_v53, %s2193_s9 }
0x1589   :  { %494 = vrot.lane.b32.xlu0 %v2402_v41, %s2193_s9 }
0x158d   :  { %659 = vrot.lane.b32.xlu0 %v2434_v27, %s2193_s9  ;;  %v1855_v27 = vpop.f32.mrb[21].mxu0 }
0x158e   :  { %v957_v28 = vpop.f32.mrb[22].mxu0 }
0x158f   :  { %v1856_v29 = vpop.f32.mrb[23].mxu0 }
0x15f3   :  { %v823_v53 = vpop.permute.xlu0 %822 }
0x15f4   :  { %v825_v41 = vmul.f32 %v2006_v7, %v823_v53 }
0x15f6   :  { %827 = vrot.lane.b32.xlu0 %v825_v41, %s2193_s9 }
0x15f7   :  { %v325_v20 = vpop.permute.xlu0 %324 }
0x15f8   :  { %328 = vst.msk [vmem:[#allocation2] sm:$0xc] %vm327_vm4, %v325_v20 }
0x15fb   :  { %v495_v6 = vpop.permute.xlu0 %494 }
0x15fc   :  { %498 = vst.msk [vmem:[#allocation2] sm:$0xc0] %vm497_vm5, %v495_v6 }
0x15ff   :  { %v660_v21 = vpop.permute.xlu0 %659 }
0x1600   :  { %662 = vst.msk [vmem:[#allocation2 + $0x8] sm:$0xc] %vm327_vm4, %v660_v21 }
0x1603   :  { %v843_v23 = vld [vmem:[#allocation2] sm:$0xff] }
0x1668   :  { %v828_v22 = vpop.permute.xlu0 %827 }
0x1669   :  { %830 = vst.msk [vmem:[#allocation2 + $0x8] sm:$0xc0] %vm497_vm5, %v828_v22 }
0x1670   :  { %v844_v24 = vld [vmem:[#allocation2 + $0x8] sm:$0xff] }
0x1671   :  { %v845_v25 = vpack.c.bf16 %v844_v24, %v843_v23 }
0x1673   :  { %1846 = vmatmul.mubr.msk.bf16.vlgmr.msra.gmra.mrb[16].mxu1 %vm114_vm1, %v845_v25 }
0x1674   :  { %1858 = vmatpush3.bf16.msra.mxu1 %v2471_v17  ;;  %1861 = vmatprep.mubr.msk.bf16.mxu1 %vm2198_vm0, %v2197_v0 }
0x1675   :  { %1859 = vmatprep.subr.bf16.mxu1 %v2197_v0 }
0x1678   :  { %1860 = vmatpush3.bf16.msra.mxu1 %v2474_v4 }
0x1679   :  { %1873 = vmatprep.subr.bf16.mxu1 %v2197_v0 }
0x1746   :  { %v901_v32 = vpop.f32.mrb[16].mxu1 }
0x1747   :  { %v2503_v33 = vadd.f32 %v1687_v30, %v901_v32  ;;  %v1847_v34 = vpop.f32.mrb[17].mxu1 }
0x1748   :  { %v904_v35 = vpop.f32.mrb[18].mxu1 }
0x1749   :  { %v960_v36 = vadd.f32 %v954_v26, %v2503_v33  ;;  %v2506_v37 = vadd.f32 %v1687_v30, %v904_v35  ;;  %v1848_v38 = vpop.f32.mrb[19].mxu1 }
0x174b   :  { %2009 = vtanh.f32 %v960_v36  ;;  %v1693_v9 = vmul.f32 -1.442695, %v960_v36 }
0x174d   :  { %2011 = vpow2.f32 %v1693_v9 }
0x1755   :  { %v2010_v39 = vpop.eup %2009 }
0x1756   :  { %970 = vrot.lane.b32.xlu1 %v2010_v39, %s2193_s9 }
0x1757   :  { %v2012_v40 = vpop.eup %2011 }
0x1758   :  { %v964_v42 = vadd.f32 1.0, %v2012_v40 }
0x175a   :  { %2013 = vrcp.f32 %v964_v42 }
0x1764   :  { %v2014_v43 = vpop.eup %2013 }
0x1765   :  { %v968_v46 = vmul.f32 0.0, %v2014_v43 }
0x17c8   :  { %v971_v44 = vpop.permute.xlu1 %970 }
0x17c9   :  { %v973_v45 = vmul.f32 %v2014_v43, %v971_v44 }
0x17cb   :  { %975 = vrot.lane.b32.xlu0 %v973_v45, %s2200_s21 }
0x183d   :  { %v976_v47 = vpop.permute.xlu0 %975 }
0x183e   :  { %v978_v48 = vadd.f32 %v976_v47, %v968_v46 }
0x1840   :  { %2015 = vtanh.f32 %v978_v48  ;;  %v1049_v10 = vrot.slane %v978_v48, 6 }
0x184a   :  { %v2016_v49 = vpop.eup %2015 }
0x184b   :  { %981 = vrot.lane.b32.xlu1 %v2016_v49, %s2193_s9 }
0x18bd   :  { %v982_v50 = vpop.permute.xlu1 %981 }
0x18be   :  { %v2511_v51 = vmul.f32 %v2014_v43, %v982_v50 }
0x18c0   :  { %v990_v52 = vpack.c.bf16 %v2511_v51, %v2511_v51 }
0x18c2   :  { %992 = vrot.lane.b32.xlu0 %v990_v52, %s2193_s9 }
0x1934   :  { %v993_v54 = vpop.permute.xlu0 %992 }
0x1935   :  { %1862 = vmatmul.mubr.msk.bf16.vlgmr.msra.gmra.mrb[20].mxu1 %vm114_vm1, %v993_v54 }
0x1936   :  { %1874 = vmatpush3.bf16.msra.mxu1 %v2471_v17  ;;  %1877 = vmatprep.mubr.msk.bf16.mxu1 %vm2198_vm0, %v2197_v0 }
0x1937   :  { %1875 = vmatprep.subr.bf16.mxu1 %v2197_v0 }
0x193a   :  { %1876 = vmatpush3.bf16.msra.mxu1 %v2474_v4 }
0x193b   :  { %1889 = vmatprep.subr.bf16.mxu1 %v2197_v0 }
0x1a08   :  { %v1031_v55 = vpop.f32.mrb[20].mxu1 }
0x1a09   :  { %v1038_v56 = vrot.slane %v1031_v55, 6  ;;  %v1863_v57 = vpop.f32.mrb[21].mxu1 }
0x1a0a   :  { %v1034_v58 = vpop.f32.mrb[22].mxu1 }
0x1a0b   :  { %v1040_v59 = vadd.f32 %v1038_v56, %v2503_v33  ;;  %v1864_v60 = vpop.f32.mrb[23].mxu1 }
0x1a0d   :  { %2017 = vtanh.f32 %v1040_v59  ;;  %v1695_v62 = vmul.f32 -1.442695, %v1040_v59 }
0x1a0f   :  { %2019 = vpow2.f32 %v1695_v62 }
0x1a17   :  { %v2018_v61 = vpop.eup %2017 }
0x1a18   :  { %1053 = vrot.lane.b32.xlu1 %v2018_v61, %s2193_s9 }
0x1a19   :  { %v2020_v63 = vpop.eup %2019 }
0x1a1a   :  { %v1044_v3 = vadd.f32 1.0, %v2020_v63 }
0x1a1c   :  { %2021 = vrcp.f32 %v1044_v3 }
0x1a26   :  { %v2022_v5 = vpop.eup %2021 }
0x1a27   :  { %v1051_v15 = vmul.f32 %v2022_v5, %v1049_v10 }
0x1a8a   :  { %v1054_v7 = vpop.permute.xlu1 %1053 }
0x1a8b   :  { %v1056_v8 = vmul.f32 %v2022_v5, %v1054_v7 }
0x1a8d   :  { %1058 = vrot.lane.b32.xlu0 %v1056_v8, %s2200_s21 }
0x1aff   :  { %v1059_v11 = vpop.permute.xlu0 %1058 }
0x1b00   :  { %v1061_v12 = vadd.f32 %v1059_v11, %v1051_v15 }
0x1b02   :  { %2023 = vtanh.f32 %v1061_v12  ;;  %v1133_v28 = vrot.slane %v1061_v12, 6 }
0x1b0c   :  { %v2024_v13 = vpop.eup %2023 }
0x1b0d   :  { %1064 = vrot.lane.b32.xlu1 %v2024_v13, %s2193_s9 }
0x1b7f   :  { %v1065_v14 = vpop.permute.xlu1 %1064 }
0x1b80   :  { %v2527_v2 = vmul.f32 %v2022_v5, %v1065_v14 }
0x1b82   :  { %v1073_v31 = vpack.c.bf16 %v2527_v2, %v2527_v2 }
0x1b84   :  { %v1075_v18 = vrot.slane %v1073_v31, 1 }
0x1b86   :  { %1076 = vrot.lane.b32.xlu0 %v1075_v18, %s2193_s9 }
0x1bf8   :  { %v1077_v1 = vpop.permute.xlu0 %1076 }
0x1bf9   :  { %1870 = vmatmul.mubr.msk.bf16.vlgmr.msra.gmra.mrb[24].mxu0 %vm114_vm1, %v1077_v1 }
0x1bfa   :  { %1882 = vmatpush3.bf16.msra.mxu0 %v2471_v17  ;;  %1885 = vmatprep.mubr.msk.bf16.mxu0 %vm2198_vm0, %v2197_v0 }
0x1bfb   :  { %1883 = vmatprep.subr.bf16.mxu0 %v2197_v0 }
0x1bfe   :  { %1884 = vmatpush3.bf16.msra.mxu0 %v2474_v4 }
0x1bff   :  { %1897 = vmatprep.subr.bf16.mxu0 %v2197_v0 }
0x1ccc   :  { %v1115_v16 = vpop.f32.mrb[24].mxu0 }
0x1ccd   :  { %v1122_v19 = vrot.slane %v1115_v16, 4  ;;  %v1871_v53 = vpop.f32.mrb[25].mxu0 }
0x1cce   :  { %v1118_v41 = vpop.f32.mrb[26].mxu0 }
0x1ccf   :  { %v1124_v20 = vadd.f32 %v1122_v19, %v2503_v33  ;;  %v1872_v6 = vpop.f32.mrb[27].mxu0 }
0x1cd1   :  { %2025 = vtanh.f32 %v1124_v20  ;;  %v1697_v22 = vmul.f32 -1.442695, %v1124_v20 }
0x1cd3   :  { %2027 = vpow2.f32 %v1697_v22 }
0x1cdb   :  { %v2026_v21 = vpop.eup %2025 }
0x1cdc   :  { %1137 = vrot.lane.b32.xlu1 %v2026_v21, %s2193_s9 }
0x1cdd   :  { %v2028_v23 = vpop.eup %2027 }
0x1cde   :  { %v1128_v24 = vadd.f32 1.0, %v2028_v23 }
0x1ce0   :  { %2029 = vrcp.f32 %v1128_v24 }
0x1cea   :  { %v2030_v25 = vpop.eup %2029 }
0x1ceb   :  { %v1135_v29 = vmul.f32 %v2030_v25, %v1133_v28 }
0x1d4e   :  { %v1138_v26 = vpop.permute.xlu1 %1137 }
0x1d4f   :  { %v1140_v27 = vmul.f32 %v2030_v25, %v1138_v26 }
0x1d51   :  { %1142 = vrot.lane.b32.xlu0 %v1140_v27, %s2200_s21 }
0x1dc3   :  { %v1143_v30 = vpop.permute.xlu0 %1142 }
0x1dc4   :  { %v1145_v32 = vadd.f32 %v1143_v30, %v1135_v29 }
0x1dc6   :  { %2031 = vtanh.f32 %v1145_v32  ;;  %v1217_v56 = vrot.slane %v1145_v32, 6 }
0x1dd0   :  { %v2032_v34 = vpop.eup %2031 }
0x1dd1   :  { %1148 = vrot.lane.b32.xlu1 %v2032_v34, %s2193_s9 }
0x1e43   :  { %v1149_v35 = vpop.permute.xlu1 %1148 }
0x1e44   :  { %v2543_v36 = vmul.f32 %v2030_v25, %v1149_v35 }
0x1e46   :  { %v1157_v38 = vpack.c.bf16 %v2543_v36, %v2543_v36 }
0x1e48   :  { %v1159_v39 = vrot.slane %v1157_v38, 2 }
0x1e4a   :  { %1160 = vrot.lane.b32.xlu0 %v1159_v39, %s2193_s9 }
0x1ebc   :  { %v1161_v9 = vpop.permute.xlu0 %1160 }
0x1ebd   :  { %1878 = vmatmul.mubr.msk.bf16.vlgmr.msra.gmra.mrb[24].mxu1 %vm114_vm1, %v1161_v9 }
0x1ebe   :  { %1890 = vmatpush3.bf16.msra.mxu1 %v2471_v17  ;;  %1893 = vmatprep.mubr.msk.bf16.mxu1 %vm2198_vm0, %v2197_v0 }
0x1ebf   :  { %1891 = vmatprep.subr.bf16.mxu1 %v2197_v0 }
0x1ec2   :  { %1892 = vmatpush3.bf16.msra.mxu1 %v2474_v4 }
0x1ec3   :  { %1905 = vmatprep.subr.bf16.mxu1 %v2197_v0 }
0x1f90   :  { %v1199_v40 = vpop.f32.mrb[24].mxu1 }
0x1f91   :  { %v1206_v42 = vrot.slane %v1199_v40, 2  ;;  %v1879_v43 = vpop.f32.mrb[25].mxu1 }
0x1f92   :  { %v1202_v44 = vpop.f32.mrb[26].mxu1 }
0x1f93   :  { %v1208_v45 = vadd.f32 %v1206_v42, %v2503_v33  ;;  %v1880_v46 = vpop.f32.mrb[27].mxu1 }
0x1f95   :  { %2033 = vtanh.f32 %v1208_v45  ;;  %v1699_v48 = vmul.f32 -1.442695, %v1208_v45 }
0x1f97   :  { %2035 = vpow2.f32 %v1699_v48 }
0x1f9f   :  { %v2034_v47 = vpop.eup %2033 }
0x1fa0   :  { %1221 = vrot.lane.b32.xlu1 %v2034_v47, %s2193_s9 }
0x1fa1   :  { %v2036_v49 = vpop.eup %2035 }
0x1fa2   :  { %v1212_v50 = vadd.f32 1.0, %v2036_v49 }
0x1fa4   :  { %2037 = vrcp.f32 %v1212_v50 }
0x1fae   :  { %v2038_v52 = vpop.eup %2037 }
0x1faf   :  { %v1219_v57 = vmul.f32 %v2038_v52, %v1217_v56 }
0x2012   :  { %v1222_v54 = vpop.permute.xlu1 %1221 }
0x2013   :  { %v1224_v55 = vmul.f32 %v2038_v52, %v1222_v54 }
0x2015   :  { %1226 = vrot.lane.b32.xlu0 %v1224_v55, %s2200_s21 }
0x2087   :  { %v1227_v58 = vpop.permute.xlu0 %1226 }
0x2088   :  { %v1229_v59 = vadd.f32 %v1227_v58, %v1219_v57 }
0x208a   :  { %2039 = vtanh.f32 %v1229_v59  ;;  %v1298_v16 = vrot.slane %v1229_v59, 6 }
0x2094   :  { %v2040_v33 = vpop.eup %2039 }
0x2095   :  { %1232 = vrot.lane.b32.xlu1 %v2040_v33, %s2193_s9 }
0x2107   :  { %v1233_v60 = vpop.permute.xlu1 %1232 }
0x2108   :  { %v2559_v61 = vmul.f32 %v2038_v52, %v1233_v60 }
0x210a   :  { %v1241_v62 = vpack.c.bf16 %v2559_v61, %v2559_v61 }
0x210c   :  { %v1243_v63 = vrot.slane %v1241_v62, 3 }
0x210e   :  { %1244 = vrot.lane.b32.xlu0 %v1243_v63, %s2193_s9 }
0x2180   :  { %v1245_v3 = vpop.permute.xlu0 %1244 }
0x2181   :  { %1886 = vmatmul.mubr.msk.bf16.vlgmr.msra.gmra.mrb[28].mxu0 %vm114_vm1, %v1245_v3 }
0x2182   :  { %1898 = vmatpush3.bf16.msra.mxu0 %v2471_v17  ;;  %1901 = vmatprep.mubr.msk.bf16.mxu0 %vm2198_vm0, %v2197_v0 }
0x2183   :  { %1899 = vmatprep.subr.bf16.mxu0 %v2197_v0 }
0x2186   :  { %1900 = vmatpush3.bf16.msra.mxu0 %v2474_v4 }
0x2187   :  { %1913 = vmatprep.subr.bf16.mxu0 %v2197_v0 }
0x2254   :  { %v1283_v5 = vpop.f32.mrb[28].mxu0 }
0x2255   :  { %v1289_v7 = vadd.f32 %v1283_v5, %v2506_v37  ;;  %v1887_v8 = vpop.f32.mrb[29].mxu0 }
0x2256   :  { %v1286_v10 = vpop.f32.mrb[30].mxu0 }
0x2257   :  { %2041 = vtanh.f32 %v1289_v7  ;;  %v1888_v15 = vpop.f32.mrb[31].mxu0  ;;  %v1701_v12 = vmul.f32 -1.442695, %v1289_v7 }
0x2259   :  { %2043 = vpow2.f32 %v1701_v12 }
0x2261   :  { %v2042_v11 = vpop.eup %2041 }
0x2262   :  { %1302 = vrot.lane.b32.xlu1 %v2042_v11, %s2193_s9 }
0x2263   :  { %v2044_v13 = vpop.eup %2043 }
0x2264   :  { %v1293_v14 = vadd.f32 1.0, %v2044_v13 }
0x2266   :  { %2045 = vrcp.f32 %v1293_v14 }
0x2270   :  { %v2046_v31 = vpop.eup %2045 }
0x2271   :  { %v1300_v19 = vmul.f32 %v2046_v31, %v1298_v16 }
0x22d4   :  { %v1303_v18 = vpop.permute.xlu1 %1302 }
0x22d5   :  { %v1305_v1 = vmul.f32 %v2046_v31, %v1303_v18 }
0x22d7   :  { %1307 = vrot.lane.b32.xlu0 %v1305_v1, %s2200_s21 }
0x2349   :  { %v1308_v53 = vpop.permute.xlu0 %1307 }
0x234a   :  { %v1310_v41 = vadd.f32 %v1308_v53, %v1300_v19 }
0x234c   :  { %2047 = vtanh.f32 %v1310_v41 }
0x2356   :  { %v2048_v20 = vpop.eup %2047 }
0x2357   :  { %1313 = vrot.lane.b32.xlu1 %v2048_v20, %s2193_s9 }
0x23c9   :  { %v1314_v6 = vpop.permute.xlu1 %1313 }
0x23ca   :  { %v2575_v21 = vmul.f32 %v2046_v31, %v1314_v6 }
0x23cc   :  { %v1322_v22 = vpack.c.bf16 %v2575_v21, %v2575_v21 }
0x23ce   :  { %1324 = vrot.lane.b32.xlu0 %v1322_v22, %s2193_s9 }
0x2440   :  { %v1325_v23 = vpop.permute.xlu0 %1324 }
0x2441   :  { %1894 = vmatmul.mubr.msk.bf16.vlgmr.msra.gmra.mrb[28].mxu1 %vm114_vm1, %v1325_v23 }
0x2442   :  { %1906 = vmatpush3.bf16.msra.mxu1 %v2471_v17  ;;  %1909 = vmatprep.mubr.msk.bf16.mxu1 %vm2198_vm0, %v2197_v0 }
0x2443   :  { %1907 = vmatprep.subr.bf16.mxu1 %v2197_v0 }
0x2446   :  { %1908 = vmatpush3.bf16.msra.mxu1 %v2474_v4  ;;  %v1381_v4 = vrot.slane %v1310_v41, 6 }
0x2514   :  { %v1363_v24 = vpop.f32.mrb[28].mxu1 }
0x2515   :  { %v1370_v25 = vrot.slane %v1363_v24, 6  ;;  %v1895_v26 = vpop.f32.mrb[29].mxu1 }
0x2516   :  { %v1366_v27 = vpop.f32.mrb[30].mxu1 }
0x2517   :  { %v1372_v28 = vadd.f32 %v1370_v25, %v2506_v37  ;;  %v1896_v29 = vpop.f32.mrb[31].mxu1 }
0x2519   :  { %2049 = vtanh.f32 %v1372_v28  ;;  %v1703_v32 = vmul.f32 -1.442695, %v1372_v28 }
0x251b   :  { %2051 = vpow2.f32 %v1703_v32 }
0x2523   :  { %v2050_v30 = vpop.eup %2049 }
0x2524   :  { %1385 = vrot.lane.b32.xlu1 %v2050_v30, %s2193_s9 }
0x2525   :  { %v2052_v17 = vpop.eup %2051 }
0x2526   :  { %v1376_v34 = vadd.f32 1.0, %v2052_v17  ;;  %v1944_v17 = vld [vmem:[#allocation9 + $0x8] sm:$0xff]  }
0x2528   :  { %2053 = vrcp.f32 %v1376_v34 }
0x2532   :  { %v2054_v35 = vpop.eup %2053 }
0x2533   :  { %v1383_v9 = vmul.f32 %v2054_v35, %v1381_v4 }
0x2596   :  { %v1386_v38 = vpop.permute.xlu1 %1385 }
0x2597   :  { %v1388_v39 = vmul.f32 %v2054_v35, %v1386_v38 }
0x2599   :  { %1390 = vrot.lane.b32.xlu0 %v1388_v39, %s2200_s21 }
0x260b   :  { %v1391_v40 = vpop.permute.xlu0 %1390 }
0x260c   :  { %v1393_v42 = vadd.f32 %v1391_v40, %v1383_v9  ;;  %v1708_v40 = vld [vmem:[%s2652_s5] ss:$0 sm:$0xff] }
0x260e   :  { %2055 = vtanh.f32 %v1393_v42  ;;  %v1465_v3 = vrot.slane %v1393_v42, 6 }
0x2618   :  { %v2056_v43 = vpop.eup %2055 }
0x2619   :  { %1396 = vrot.lane.b32.xlu1 %v2056_v43, %s2193_s9 }
0x268b   :  { %v1397_v44 = vpop.permute.xlu1 %1396 }
0x268c   :  { %v2590_v45 = vmul.f32 %v2054_v35, %v1397_v44 }
0x268e   :  { %v1405_v46 = vpack.c.bf16 %v2590_v45, %v2590_v45 }
0x2690   :  { %v1407_v47 = vrot.slane %v1405_v46, 1 }
0x2692   :  { %1408 = vrot.lane.b32.xlu0 %v1407_v47, %s2193_s9 }
0x2704   :  { %v1409_v48 = vpop.permute.xlu0 %1408 }
0x2705   :  { %1902 = vmatmul.mubr.msk.bf16.vlgmr.msra.gmra.mrb[32].mxu0 %vm114_vm1, %v1409_v48 }
0x2706   :  { %1917 = vmatprep.mubr.msk.bf16.mxu0 %vm2198_vm0, %v2197_v0 }
0x27d8   :  { %v1447_v49 = vpop.f32.mrb[32].mxu0 }
0x27d9   :  { %v1454_v50 = vrot.slane %v1447_v49, 4  ;;  %v1903_v52 = vpop.f32.mrb[33].mxu0 }
0x27da   :  { %v1450_v54 = vpop.f32.mrb[34].mxu0 }
0x27db   :  { %v1456_v55 = vadd.f32 %v1454_v50, %v2506_v37  ;;  %v1904_v56 = vpop.f32.mrb[35].mxu0 }
0x27dd   :  { %2057 = vtanh.f32 %v1456_v55  ;;  %v1705_v58 = vmul.f32 -1.442695, %v1456_v55 }
0x27df   :  { %2059 = vpow2.f32 %v1705_v58 }
0x27e7   :  { %v2058_v57 = vpop.eup %2057 }
0x27e8   :  { %1469 = vrot.lane.b32.xlu1 %v2058_v57, %s2193_s9 }
0x27e9   :  { %v2060_v59 = vpop.eup %2059 }
0x27ea   :  { %v1460_v33 = vadd.f32 1.0, %v2060_v59 }
0x27ec   :  { %2061 = vrcp.f32 %v1460_v33 }
0x27f6   :  { %v2062_v60 = vpop.eup %2061 }
0x27f7   :  { %v1467_v5 = vmul.f32 %v2062_v60, %v1465_v3 }
0x285a   :  { %v1470_v62 = vpop.permute.xlu1 %1469 }
0x285b   :  { %v1472_v63 = vmul.f32 %v2062_v60, %v1470_v62 }
0x285d   :  { %1474 = vrot.lane.b32.xlu0 %v1472_v63, %s2200_s21 }
0x28cf   :  { %v1475_v7 = vpop.permute.xlu0 %1474 }
0x28d0   :  { %v1477_v8 = vadd.f32 %v1475_v7, %v1467_v5 }
0x28d2   :  { %2063 = vtanh.f32 %v1477_v8 }
0x28dc   :  { %v2064_v10 = vpop.eup %2063 }
0x28dd   :  { %1480 = vrot.lane.b32.xlu1 %v2064_v10, %s2193_s9 }
0x294f   :  { %v1481_v15 = vpop.permute.xlu1 %1480 }
0x2950   :  { %v1483_v11 = vmul.f32 %v2062_v60, %v1481_v15 }
0x2952   :  { %v1489_v12 = vpack.c.bf16 %v1483_v11, %v1483_v11 }
0x2954   :  { %v1491_v13 = vrot.slane %v1489_v12, 2 }
0x2956   :  { %1492 = vrot.lane.b32.xlu0 %v1491_v13, %s2193_s9 }
0x29c8   :  { %v1493_v14 = vpop.permute.xlu0 %1492 }
0x29c9   :  { %1910 = vmatmul.mubr.msk.bf16.vlgmr.msra.gmra.mrb[32].mxu1 %vm114_vm1, %v1493_v14 }
0x2a9c   :  { %v1531_v31 = vpop.f32.mrb[32].mxu1 }
0x2a9d   :  { %v1538_v18 = vrot.slane %v1531_v31, 2  ;;  %v1911_v1 = vpop.f32.mrb[33].mxu1 }
0x2a9e   :  { %v1534_v16 = vpop.f32.mrb[34].mxu1 }
0x2a9f   :  { %v1540_v19 = vadd.f32 %v1538_v18, %v2506_v37  ;;  %v1912_v53 = vpop.f32.mrb[35].mxu1  ;;  %v1549_v37 = vrot.slane %v1477_v8, 6 }
0x2aa1   :  { %2065 = vtanh.f32 %v1540_v19  ;;  %v1707_v20 = vmul.f32 -1.442695, %v1540_v19 }
0x2aa3   :  { %2067 = vpow2.f32 %v1707_v20 }
0x2aab   :  { %v2066_v41 = vpop.eup %2065 }
0x2aac   :  { %1553 = vrot.lane.b32.xlu1 %v2066_v41, %s2193_s9 }
0x2aad   :  { %v2068_v6 = vpop.eup %2067 }
0x2aae   :  { %v1544_v22 = vadd.f32 1.0, %v2068_v6 }
0x2ab0   :  { %2069 = vrcp.f32 %v1544_v22 }
0x2aba   :  { %v2070_v23 = vpop.eup %2069 }
0x2abb   :  { %v1551_v26 = vmul.f32 %v2070_v23, %v1549_v37 }
0x2b1e   :  { %v1554_v24 = vpop.permute.xlu1 %1553 }
0x2b1f   :  { %v1556_v25 = vmul.f32 %v2070_v23, %v1554_v24 }
0x2b21   :  { %1558 = vrot.lane.b32.xlu0 %v1556_v25, %s2200_s21 }
0x2b25   :  { %986 = vrot.lane.b32.xlu0 %v2511_v51, %s2193_s9 }
0x2b29   :  { %1153 = vrot.lane.b32.xlu0 %v2543_v36, %s2193_s9 }
0x2b2d   :  { %1318 = vrot.lane.b32.xlu0 %v2575_v21, %s2193_s9  ;;  %v1943_v21 = vld [vmem:[#allocation9] sm:$0xff]  }
0x2b2e   :  { %1914 = vmatpush3.bf16.msra.mxu0 %v1943_v21 }
0x2b2f   :  { %1915 = vmatprep.subr.bf16.mxu0 %v2197_v0 }
0x2b31   :  { %1485 = vrot.lane.b32.xlu0 %v1483_v11, %s2193_s9 }
0x2b32   :  { %1916 = vmatpush3.bf16.msra.mxu0 %v1944_v17 }
0x2b93   :  { %v1559_v27 = vpop.permute.xlu0 %1558 }
0x2b94   :  { %v1561_v28 = vadd.f32 %v1559_v27, %v1551_v26 }
0x2b96   :  { %2071 = vtanh.f32 %v1561_v28 }
0x2b97   :  { %v987_v29 = vpop.permute.xlu0 %986 }
0x2b98   :  { %989 = vst.msk [vmem:[#allocation2] sm:$0x3] %vm243_vm2, %v987_v29 }
0x2b9b   :  { %v1154_v30 = vpop.permute.xlu0 %1153 }
0x2b9c   :  { %1156 = vst.msk [vmem:[#allocation2] sm:$0x30] %vm412_vm3, %v1154_v30 }
0x2b9f   :  { %v1319_v51 = vpop.permute.xlu0 %1318 }
0x2ba0   :  { %v2072_v32 = vpop.eup %2071  ;;  %1321 = vst.msk [vmem:[#allocation2 + $0x8] sm:$0x3] %vm243_vm2, %v1319_v51 }
0x2ba1   :  { %1564 = vrot.lane.b32.xlu1 %v2072_v32, %s2193_s9 }
0x2ba3   :  { %v1486_v36 = vpop.permute.xlu0 %1485 }
0x2ba4   :  { %1488 = vst.msk [vmem:[#allocation2 + $0x8] sm:$0x30] %vm412_vm3, %v1486_v36 }
0x2ba5   :  { %1069 = vrot.lane.b32.xlu1 %v2527_v2, %s2193_s9 }
0x2ba9   :  { %1237 = vrot.lane.b32.xlu1 %v2559_v61, %s2193_s9 }
0x2bad   :  { %1401 = vrot.lane.b32.xlu1 %v2590_v45, %s2193_s9 }
0x2c13   :  { %v1565_v34 = vpop.permute.xlu1 %1564 }
0x2c14   :  { %v1567_v35 = vmul.f32 %v2070_v23, %v1565_v34 }
0x2c16   :  { %1569 = vrot.lane.b32.xlu1 %v1567_v35, %s2193_s9  ;;  %s2201_s9 = smov [#allocation11]  }
0x2c17   :  { %v1070_v38 = vpop.permute.xlu1 %1069  ;;  %s1650_s26 = sshll.u32 %s2201_s9, 4  ;;  %s1651_s26 = int_to_ptr.vmem [resolvable:$true] %s1650_s26 }
0x2c18   :  { %1072 = vst.msk [vmem:[#allocation2] sm:$0xc] %vm327_vm4, %v1070_v38  ;;  %s2161_s27 = scalar_lea.vmem %s1651_s26, 256  ;;  %p2166_p5 = scmp.lt.s32.totalorder %s1651_s26, %s1651_s26 }
0x2c19   :  { %p2162_p4 = scmp.ne.s32.totalorder %s1651_s26, %s2161_s27  ;;  %p2167_p6 = scmp.lt.s32.totalorder %s2161_s27, %s2161_s27 }
0x2c1b   :  { %v1238_v2 = vpop.permute.xlu1 %1237  ;;  %p2168_p7 = por %p2167_p6, %p2166_p5 }
0x2c1c   :  { %1240 = vst.msk [vmem:[#allocation2] sm:$0xc0] %vm497_vm5, %v1238_v2 }
0x2c1d   :  { %p2169_p8 = pnand %p2168_p7, %p2162_p4 }
0x2c1f   :  { %v1402_v61 = vpop.permute.xlu1 %1401 }
0x2c20   :  { %1404 = vst.msk [vmem:[#allocation2 + $0x8] sm:$0xc] %vm327_vm4, %v1402_v61 }
0x2c23   :  { %v1573_v4 = vld [vmem:[#allocation2] sm:$0xff] }
0x2c88   :  { %v1570_v39 = vpop.permute.xlu1 %1569 }
0x2c89   :  { %1572 = vst.msk [vmem:[#allocation2 + $0x8] sm:$0xc0] %vm497_vm5, %v1570_v39 }
0x2c90   :  { %v1574_v9 = vld [vmem:[#allocation2 + $0x8] sm:$0xff] }
0x2c91   :  { %v1575_v0 = vpack.c.bf16 %v1574_v9, %v1573_v4 }
0x2c93   :  { %1918 = vmatmul.mubr.msk.bf16.vlgmr.msra.gmra.mrb[36].mxu0 %vm114_vm1, %v1575_v0 }
0x2d66   :  { %v1636_v42 = vpop.f32.mrb[36].mxu0 }
0x2d67   :  { %v1637_v43 = vadd.f32 %v1708_v40, %v1636_v42  ;;  %v1919_v44 = vpop.f32.mrb[37].mxu0 }
0x2d68   :  { %v1639_v45 = vpop.f32.mrb[38].mxu0 }
0x2d69   :  { %1643 = vst [vmem:[#allocation11] sm:$0xff] %v1637_v43  ;;  %v1640_v46 = vadd.f32 %v1708_v40, %v1639_v45  ;;  %v1920_v47 = vpop.f32.mrb[39].mxu0 }
0x2d6b   :  { %1644 = vst [vmem:[#allocation11 + $0x8] sm:$0xff] %v1640_v46 }
0x2d6c   :  { %2172 = shalt.err (!%p2169_p8)
}
0x2d6d   :  { %s2173_s29 = scalar_lea.hbm %s2653_s6, 256 }
0x2d6e   :  { %p2174_p9 = scmp.ne.s32.totalorder %s2653_s6, %s2173_s29  ;;  %p2177_p10 = scmp.lt.u32.totalorder %s2173_s29, %s2653_s6 }
0x2d70   :  { %p2179_p11 = pnand %p2177_p10, %p2174_p9 }
0x2d72   :  { %2182 = shalt.err (!%p2179_p11)
}
0x2d73   :  { %s2202_s0 = smov 128   ;;  %s2203_s24 = smov 8  }
0x2d74   :  { %1656 = dma.vmem_to_hbm [thread:$0]  %s1651_s26, 256, %s2653_s6, [#allocation5], %s2202_s0, %s2202_s0, %s2203_s24  }
0x2d75   :  { %2189 = dma.done.wait [#allocation5], 256  }
0x2d76   :  { %2190 = vsyncadd [#allocation5], 4294967040 }
0x2d77   :  { %1660 = vsyncpa [#allocation4], 1 }
0x2d78   :  { %1661 = vsyncpa [#allocation7], 1 }
0x2d79   :  { %1662 = vsyncpa [#allocation10], 1 }
0x2d7a   :  { %1663 = vsyncpa [#allocation5], 1 }

</bundles_post_ra>
